<compile_context>
chip_gen: v7x
topology: tpu7x:2x2x1
jax: 0.10.0
libtpu: 0.0.40
codegen_flags: <defaults>
</compile_context>

<pallas_src>
import math

import jax
import jax.numpy as jnp
from jax import lax
from jax.experimental import pallas as pl
from jax.experimental.pallas import tpu as pltpu

EPS = 1e-5                  # torch.nn.LayerNorm default eps
_MAX_ROW_TILE = 128         # max query rows processed per inner-loop step

_WEIGHT_KEYS = ("ln1_w", "ln1_b", "wqkv_t", "bqkv", "wo_t", "bo",
                "ln2_w", "ln2_b", "wfc_t", "bfc", "wpr_t", "bpr")


def _row_tile(n, max_tile=_MAX_ROW_TILE):
    """Largest divisor of n that is <= max_tile and a multiple of 8."""
    if n <= max_tile:
        return n
    for t in range(max_tile, 7, -1):
        if n % t == 0 and t % 8 == 0:
            return t
    return n   # e.g. prime N (ViT's 197): fall back to a single row tile


def _layernorm(x, w, b):
    mu = jnp.mean(x, axis=-1, keepdims=True)
    xc = x - mu
    var = jnp.mean(xc * xc, axis=-1, keepdims=True)
    return xc * lax.rsqrt(var + EPS) * w + b


def make_layer_kernel(num_heads):
    """Fused residual block: x -> x + out_proj(MHA(LN1 x)) -> (+) MLP(LN2 .)."""
    inv_sqrt2 = 1.0 / math.sqrt(2.0)

    def kernel(x_ref, ln1w_ref, ln1b_ref, wqkv_ref, bqkv_ref, wo_ref, bo_ref,
               ln2w_ref, ln2b_ref, wfc_ref, bfc_ref, wpr_ref, bpr_ref,
               o_ref, q_scr, k_scr, v_scr, ctx_scr):
        _, n, d = x_ref.shape
        hd = d // num_heads
        tq = _row_tile(n)
        n_tiles = n // tq

        # ---- pass 1: LN1 + packed QKV projection + up-front head relayout ----
        def proj_body(t, carry):
            r0 = pl.multiple_of(t * tq, tq)
            xr = x_ref[0, pl.ds(r0, tq), :].astype(jnp.float32)
            xn = _layernorm(xr, ln1w_ref[...], ln1b_ref[...])
            # W_qkv is (D, 3D) with 1/sqrt(hd) already folded into the Q cols.
            qkv = jnp.dot(xn.astype(jnp.bfloat16), wqkv_ref[...],
                          preferred_element_type=jnp.float32) + bqkv_ref[...]
            qkv = qkv.astype(jnp.bfloat16)
            for h in range(num_heads):
                c0 = h * hd
                q_scr[h, pl.ds(r0, tq), :] = qkv[:, c0:c0 + hd]
                k_scr[h, pl.ds(r0, tq), :] = qkv[:, d + c0:d + c0 + hd]
                v_scr[h, pl.ds(r0, tq), :] = qkv[:, 2 * d + c0:2 * d + c0 + hd]
            return carry
        lax.fori_loop(0, n_tiles, proj_body, 0)

        # ---- pass 2: head-batched attention + full-D out-proj + MLP ----
        def row_body(t, carry):
            r0 = pl.multiple_of(t * tq, tq)
            qh = q_scr[:, pl.ds(r0, tq), :]                    # (H, tq, hd) bf16
            s = jnp.einsum('hqd,hkd->hqk', qh, k_scr[...],
                           preferred_element_type=jnp.float32)  # (H, tq, N)
            m = jnp.max(s, axis=-1, keepdims=True)
            e = jnp.exp(s - m)
            denom = jnp.sum(e, axis=-1, keepdims=True)
            # approximate reciprocal (EUP slot): rows sum to ~1, covered by the
            # tolerance test in __main__.
            probs = (e * pl.reciprocal(denom, approx=True)).astype(jnp.bfloat16)
            ctx = jnp.einsum('hqk,hkd->hqd', probs, v_scr[...],
                             preferred_element_type=jnp.float32)  # (H, tq, hd)
            # concatenate heads once into scratch -> single (tq,D)@(D,D) out-proj
            for h in range(num_heads):
                ctx_scr[:, h * hd:(h + 1) * hd] = ctx[h].astype(jnp.bfloat16)
            attn = jnp.dot(ctx_scr[...], wo_ref[...],
                           preferred_element_type=jnp.float32) + bo_ref[...]
            x_rows = x_ref[0, pl.ds(r0, tq), :].astype(jnp.float32)
            x1 = x_rows + attn                                  # ls_1 == Identity

            xn2 = _layernorm(x1, ln2w_ref[...], ln2b_ref[...])
            hmid = jnp.dot(xn2.astype(jnp.bfloat16), wfc_ref[...],
                           preferred_element_type=jnp.float32) + bfc_ref[...]
            # exact (erf-based) GELU in fp32, matching torch.nn.GELU() default
            g = 0.5 * hmid * (1.0 + lax.erf(hmid * inv_sqrt2))
            y = jnp.dot(g.astype(jnp.bfloat16), wpr_ref[...],
                        preferred_element_type=jnp.float32) + bpr_ref[...]
            o_ref[0, pl.ds(r0, tq), :] = (x1 + y).astype(o_ref.dtype)  # ls_2 == Id
            return carry
        lax.fori_loop(0, n_tiles, row_body, 0)

    return kernel


def _const_map(ndim):
    return lambda b: (0,) * ndim


def _weight_spec(arr, single_buffer):
    idx = _const_map(arr.ndim)
    if single_buffer:
        # constant block index -> no need for double buffering
        return pl.BlockSpec(arr.shape, idx, pipeline_mode=pl.Buffered(1))
    return pl.BlockSpec(arr.shape, idx)


def _vmem_limit_bytes():
    mib = 1024 * 1024
    try:
        cap = int(pltpu.get_tpu_info().vmem_capacity_bytes)
    except Exception:
        cap = 64 * mib
    # leave ~8 MiB slack; never exceed what v5e/v6e accept comfortably
    return int(min(max(cap - 8 * mib, 32 * mib), 110 * mib))


def _build_layer_fn(kernel, num_heads, x_shape, x_dtype, example_weights,
                    single_buffer):
    B, N, D = x_shape
    hd = D // num_heads
    tq = _row_tile(N)
    in_specs = [pl.BlockSpec((1, N, D), lambda b: (b, 0, 0))]
    in_specs += [_weight_spec(a, single_buffer) for a in example_weights]
    grid_spec = pltpu.PrefetchScalarGridSpec(
        num_scalar_prefetch=0,
        grid=(B,),
        in_specs=in_specs,
        out_specs=pl.BlockSpec((1, N, D), lambda b: (b, 0, 0)),
        scratch_shapes=[
            pltpu.VMEM((num_heads, N, hd), jnp.bfloat16),   # Q (scale folded in)
            pltpu.VMEM((num_heads, N, hd), jnp.bfloat16),   # K
            pltpu.VMEM((num_heads, N, hd), jnp.bfloat16),   # V
            pltpu.VMEM((tq, D), jnp.bfloat16),              # concat-head context
        ],
    )
    call = pl.pallas_call(
        kernel,
        out_shape=jax.ShapeDtypeStruct((B, N, D), x_dtype),
        grid_spec=grid_spec,
        compiler_params=pltpu.CompilerParams(
            dimension_semantics=("parallel",),
            vmem_limit_bytes=_vmem_limit_bytes(),
        ),
    )
    return jax.jit(call)


def init_params(key, width, layers, mlp_ratio=4.0):
    """Parameters in the torch.nn convention: weight = (out_features, in_features)."""
    mlp_w = int(width * mlp_ratio)
    params = []
    for _ in range(layers):
        key, k0, k1, k2, k3 = jax.random.split(key, 5)
        params.append({
            "ln1_w": jnp.ones((width,), jnp.float32),
            "ln1_b": jnp.zeros((width,), jnp.float32),
            "in_proj_w": 0.02 * jax.random.normal(k0, (3 * width, width), jnp.float32),
            "in_proj_b": jnp.zeros((3 * width,), jnp.float32),
            "out_proj_w": 0.02 * jax.random.normal(k1, (width, width), jnp.float32),
            "out_proj_b": jnp.zeros((width,), jnp.float32),
            "ln2_w": jnp.ones((width,), jnp.float32),
            "ln2_b": jnp.zeros((width,), jnp.float32),
            "c_fc_w": 0.02 * jax.random.normal(k2, (mlp_w, width), jnp.float32),
            "c_fc_b": jnp.zeros((mlp_w,), jnp.float32),
            "c_proj_w": 0.02 * jax.random.normal(k3, (width, mlp_w), jnp.float32),
            "c_proj_b": jnp.zeros((width,), jnp.float32),
        })
    return params


def pack_params(params, heads):
    """One-time host repack: transpose to (in,out) layout, cast matmul weights
    to bf16 and fold the 1/sqrt(head_dim) query scale into W_q / b_q."""
    packed = []
    for layer in params:
        D = layer["in_proj_w"].shape[1]
        hd = D // heads
        M = layer["c_fc_w"].shape[0]
        scale = 1.0 / math.sqrt(hd)
        col_scale = jnp.concatenate([jnp.full((D,), scale, jnp.float32),
                                     jnp.ones((2 * D,), jnp.float32)])
        packed.append({
            "ln1_w": layer["ln1_w"].reshape(1, D).astype(jnp.float32),
            "ln1_b": layer["ln1_b"].reshape(1, D).astype(jnp.float32),
            "wqkv_t": (layer["in_proj_w"].T * col_scale[None, :]).astype(jnp.bfloat16),
            "bqkv": (layer["in_proj_b"] * col_scale).reshape(1, 3 * D).astype(jnp.float32),
            "wo_t": layer["out_proj_w"].T.astype(jnp.bfloat16),          # (D, D)
            "bo": layer["out_proj_b"].reshape(1, D).astype(jnp.float32),
            "ln2_w": layer["ln2_w"].reshape(1, D).astype(jnp.float32),
            "ln2_b": layer["ln2_b"].reshape(1, D).astype(jnp.float32),
            "wfc_t": layer["c_fc_w"].T.astype(jnp.bfloat16),             # (D, M)
            "bfc": layer["c_fc_b"].reshape(1, M).astype(jnp.float32),
            "wpr_t": layer["c_proj_w"].T.astype(jnp.bfloat16),           # (M, D)
            "bpr": layer["c_proj_b"].reshape(1, D).astype(jnp.float32),
        })
    return packed


def tome_openai_transformer_forward(x, packed_params, heads):
    """Mirrors ToMEOpenAITransformer.forward with r_total=0 defaults.

    Returns (x, padding_mask, final_size, aux_dict) like the PyTorch module.
    The output / hidden_states dtype follows the input dtype (pass bf16 x to
    halve HBM traffic)."""
    B, N, D = x.shape
    assert D % heads == 0
    kernel = make_layer_kernel(heads)
    w0 = [packed_params[0][k] for k in _WEIGHT_KEYS]

    def run(single_buffer):
        fn = _build_layer_fn(kernel, heads, (B, N, D), x.dtype, w0, single_buffer)
        xc = x
        hidden = []
        for lay in packed_params:
            xc = fn(xc, *[lay[k] for k in _WEIGHT_KEYS])
            hidden.append(xc)
        jax.block_until_ready(xc)
        return xc, hidden

    try:
        x_out, hidden_states = run(True)
    except Exception:
        # fallback for jax versions that reject single-buffered weight specs
        x_out, hidden_states = run(False)

    # pos_tracking = eye(N).expand(B, N, N); never modified since r == 0
    pos_tracking = jnp.broadcast_to(jnp.eye(N, dtype=jnp.int32), (B, N, N))
    padding_mask = None      # no ToMe batch-level merging with r == 0
    final_size = None        # _tome_info['size'] stays None
    nlayers = len(packed_params)
    aux = {
        "hidden_states": hidden_states,
        "padding_masks": [padding_mask] * nlayers,
        "sizes": [None] * nlayers,
        "pos_trackings": [pos_tracking] * nlayers,
    }
    return x_out, padding_mask, final_size, aux


# ----------------------------- pure-JAX reference -----------------------------

def _ref_layernorm(x, w, b):
    mu = jnp.mean(x, axis=-1, keepdims=True)
    var = jnp.mean((x - mu) ** 2, axis=-1, keepdims=True)
    return (x - mu) / jnp.sqrt(var + EPS) * w + b


def reference_forward(x, params, heads):
    """fp32 reference mirroring the PyTorch module on the r_total=0 path."""
    x = x.astype(jnp.float32)
    B, N, D = x.shape
    hd = D // heads
    hidden = []
    for lay in params:
        xn = _ref_layernorm(x, lay["ln1_w"], lay["ln1_b"])
        qkv = xn @ lay["in_proj_w"].T + lay["in_proj_b"]
        q, k, v = jnp.split(qkv, 3, axis=-1)

        def to_heads(a):
            return a.reshape(B, N, heads, hd).transpose(0, 2, 1, 3)

        qh, kh, vh = to_heads(q), to_heads(k), to_heads(v)
        s = jnp.einsum('bhqd,bhkd->bhqk', qh, kh) / math.sqrt(hd)
        pm = jax.nn.softmax(s, axis=-1)
        ctx = jnp.einsum('bhqk,bhkd->bhqd', pm, vh)
        ctx = ctx.transpose(0, 2, 1, 3).reshape(B, N, D)
        x = x + ctx @ lay["out_proj_w"].T + lay["out_proj_b"]
        xn2 = _ref_layernorm(x, lay["ln2_w"], lay["ln2_b"])
        h1 = xn2 @ lay["c_fc_w"].T + lay["c_fc_b"]
        g = 0.5 * h1 * (1.0 + lax.erf(h1 / math.sqrt(2.0)))
        x = x + g @ lay["c_proj_w"].T + lay["c_proj_b"]
        hidden.append(x)
    return x, hidden


if __name__ == "__main__":
    B, N = 2, 8
    width, heads, layers = 32, 4, 2

    key = jax.random.PRNGKey(0)
    kx, kp = jax.random.split(key)
    x32 = jax.random.normal(kx, (B, N, width), dtype=jnp.float32)
    params = init_params(kp, width, layers)
    packed = pack_params(params, heads)

    # ---- fp32 activation carry (module default dtype path) ----
    out32, padding_mask, final_size, aux = tome_openai_transformer_forward(
        x32, packed, heads)
    jax.block_until_ready(out32)
    assert out32.shape == (B, N, width)
    assert padding_mask is None and final_size is None
    assert len(aux["hidden_states"]) == layers
    assert jnp.all(jnp.isfinite(out32))
    ref32, _ = reference_forward(x32, params, heads)
    err32 = float(jnp.max(jnp.abs(out32.astype(jnp.float32) - ref32)))
    assert err32 < 1e-2, f"fp32-carry max abs err vs reference: {err32}"

    # ---- bf16 activation carry (recommended: halves HBM traffic) ----
    xb = x32.astype(jnp.bfloat16)
    outb, _, _, auxb = tome_openai_transformer_forward(xb, packed, heads)
    jax.block_until_ready(outb)
    assert outb.dtype == jnp.bfloat16
    refb, _ = reference_forward(xb.astype(jnp.float32), params, heads)
    errb = float(jnp.max(jnp.abs(outb.astype(jnp.float32) - refb)))
    assert errb < 8e-2, f"bf16-carry max abs err vs reference: {errb}"

    print("KERNEL_OK")
</pallas_src>

<mosaic_0001>
module attributes {stable_mosaic.version = 11 : i64} {
  func.func @kernel(%arg0: i32, %arg1: memref<1x8x32xf32, #tpu.memory_space<vmem>>, %arg2: memref<1x32xf32, #tpu.memory_space<vmem>>, %arg3: memref<1x32xf32, #tpu.memory_space<vmem>>, %arg4: memref<32x96xbf16, #tpu.memory_space<vmem>>, %arg5: memref<1x96xf32, #tpu.memory_space<vmem>>, %arg6: memref<32x32xbf16, #tpu.memory_space<vmem>>, %arg7: memref<1x32xf32, #tpu.memory_space<vmem>>, %arg8: memref<1x32xf32, #tpu.memory_space<vmem>>, %arg9: memref<1x32xf32, #tpu.memory_space<vmem>>, %arg10: memref<32x128xbf16, #tpu.memory_space<vmem>>, %arg11: memref<1x128xf32, #tpu.memory_space<vmem>>, %arg12: memref<128x32xbf16, #tpu.memory_space<vmem>>, %arg13: memref<1x32xf32, #tpu.memory_space<vmem>>, %arg14: memref<1x8x32xf32, #tpu.memory_space<vmem>>, %arg15: memref<4x8x8xbf16, #tpu.memory_space<vmem>>, %arg16: memref<4x8x8xbf16, #tpu.memory_space<vmem>>, %arg17: memref<4x8x8xbf16, #tpu.memory_space<vmem>>, %arg18: memref<8x32xbf16, #tpu.memory_space<vmem>>) attributes {dimension_semantics = [#tpu.dimension_semantics<parallel>], iteration_bounds = array<i64: 2>, scalar_prefetch = 0 : i64, scratch_operands = 4 : i64, tpu.core_type = #tpu.core_type<tc>, window_params = [{transform_indices = @transform_0, window_bounds = array<i64: 1, 8, 32>}, {pipeline_mode = #tpu.pipeline_mode<synchronous>, transform_indices = @transform_1, window_bounds = array<i64: 1, 32>}, {pipeline_mode = #tpu.pipeline_mode<synchronous>, transform_indices = @transform_2, window_bounds = array<i64: 1, 32>}, {pipeline_mode = #tpu.pipeline_mode<synchronous>, transform_indices = @transform_3, window_bounds = array<i64: 32, 96>}, {pipeline_mode = #tpu.pipeline_mode<synchronous>, transform_indices = @transform_4, window_bounds = array<i64: 1, 96>}, {pipeline_mode = #tpu.pipeline_mode<synchronous>, transform_indices = @transform_5, window_bounds = array<i64: 32, 32>}, {pipeline_mode = #tpu.pipeline_mode<synchronous>, transform_indices = @transform_6, window_bounds = array<i64: 1, 32>}, {pipeline_mode = #tpu.pipeline_mode<synchronous>, transform_indices = @transform_7, window_bounds = array<i64: 1, 32>}, {pipeline_mode = #tpu.pipeline_mode<synchronous>, transform_indices = @transform_8, window_bounds = array<i64: 1, 32>}, {pipeline_mode = #tpu.pipeline_mode<synchronous>, transform_indices = @transform_9, window_bounds = array<i64: 32, 128>}, {pipeline_mode = #tpu.pipeline_mode<synchronous>, transform_indices = @transform_10, window_bounds = array<i64: 1, 128>}, {pipeline_mode = #tpu.pipeline_mode<synchronous>, transform_indices = @transform_11, window_bounds = array<i64: 128, 32>}, {pipeline_mode = #tpu.pipeline_mode<synchronous>, transform_indices = @transform_12, window_bounds = array<i64: 1, 32>}, {transform_indices = @transform_13, window_bounds = array<i64: 1, 8, 32>}]} {
    %c0_i32 = arith.constant 0 : i32
    %c8_i32 = arith.constant 8 : i32
    %0 = arith.muli %c0_i32, %c8_i32 : i32
    %1 = tpu.assume_multiple %0, 8 : i32
    %c0 = arith.constant 0 : index
    %2 = arith.index_cast %1 : i32 to index
    %c0_0 = arith.constant 0 : index
    %3 = vector.load %arg1[%c0, %2, %c0_0] : memref<1x8x32xf32, #tpu.memory_space<vmem>>, vector<1x8x32xf32>
    %4 = vector.shape_cast %3 : vector<1x8x32xf32> to vector<8x32xf32>
    %c0_1 = arith.constant 0 : index
    %c0_2 = arith.constant 0 : index
    %5 = vector.load %arg2[%c0_1, %c0_2] : memref<1x32xf32, #tpu.memory_space<vmem>>, vector<1x32xf32>
    %c0_3 = arith.constant 0 : index
    %c0_4 = arith.constant 0 : index
    %6 = vector.load %arg3[%c0_3, %c0_4] : memref<1x32xf32, #tpu.memory_space<vmem>>, vector<1x32xf32>
    %cst = arith.constant dense<0.000000e+00> : vector<8xf32>
    %7 = vector.multi_reduction <add>, %4, %cst [1] : vector<8x32xf32> to vector<8xf32>
    %8 = vector.shape_cast %7 : vector<8xf32> to vector<8x1xf32>
    %cst_5 = arith.constant 3.200000e+01 : f32
    %9 = vector.broadcast %cst_5 : f32 to vector<8x1xf32>
    %10 = arith.divf %8, %9 : vector<8x1xf32>
    %11 = vector.broadcast %10 : vector<8x1xf32> to vector<8x32xf32>
    %12 = arith.subf %4, %11 : vector<8x32xf32>
    %13 = arith.mulf %12, %12 : vector<8x32xf32>
    %cst_6 = arith.constant dense<0.000000e+00> : vector<8xf32>
    %14 = vector.multi_reduction <add>, %13, %cst_6 [1] : vector<8x32xf32> to vector<8xf32>
    %15 = vector.shape_cast %14 : vector<8xf32> to vector<8x1xf32>
    %cst_7 = arith.constant 3.200000e+01 : f32
    %16 = vector.broadcast %cst_7 : f32 to vector<8x1xf32>
    %17 = arith.divf %15, %16 : vector<8x1xf32>
    %cst_8 = arith.constant 9.99999974E-6 : f32
    %18 = vector.broadcast %cst_8 : f32 to vector<8x1xf32>
    %19 = arith.addf %17, %18 : vector<8x1xf32>
    %20 = math.rsqrt %19 : vector<8x1xf32>
    %21 = vector.broadcast %20 : vector<8x1xf32> to vector<8x32xf32>
    %22 = arith.mulf %12, %21 : vector<8x32xf32>
    %23 = vector.broadcast %5 : vector<1x32xf32> to vector<8x32xf32>
    %24 = arith.mulf %22, %23 : vector<8x32xf32>
    %25 = vector.broadcast %6 : vector<1x32xf32> to vector<8x32xf32>
    %26 = arith.addf %24, %25 : vector<8x32xf32>
    %27 = arith.truncf %26 : vector<8x32xf32> to vector<8x32xbf16>
    %c0_9 = arith.constant 0 : index
    %c0_10 = arith.constant 0 : index
    %28 = vector.load %arg4[%c0_9, %c0_10] : memref<32x96xbf16, #tpu.memory_space<vmem>>, vector<32x96xbf16>
    %cst_11 = arith.constant dense<0.000000e+00> : vector<8x96xf32>
    %29 = tpu.matmul %27, %28, %cst_11 {dimension_numbers = #tpu.dot_dimension_numbers<[1], [0], [0], [1], [0, 0, 1, 1], [], []>} : vector<8x32xbf16>, vector<32x96xbf16>, vector<8x96xf32> -> vector<8x96xf32>
    %c0_12 = arith.constant 0 : index
    %c0_13 = arith.constant 0 : index
    %30 = vector.load %arg5[%c0_12, %c0_13] : memref<1x96xf32, #tpu.memory_space<vmem>>, vector<1x96xf32>
    %31 = vector.broadcast %30 : vector<1x96xf32> to vector<8x96xf32>
    %32 = arith.addf %29, %31 : vector<8x96xf32>
    %33 = arith.truncf %32 : vector<8x96xf32> to vector<8x96xbf16>
    %34 = vector.extract_strided_slice %33 {offsets = [0, 0], sizes = [8, 8], strides = [1, 1]} : vector<8x96xbf16> to vector<8x8xbf16>
    %c0_14 = arith.constant 0 : index
    %35 = arith.index_cast %1 : i32 to index
    %c0_15 = arith.constant 0 : index
    %36 = vector.load %arg15[%c0_14, %35, %c0_15] : memref<4x8x8xbf16, #tpu.memory_space<vmem>>, vector<1x8x8xbf16>
    %37 = vector.shape_cast %36 : vector<1x8x8xbf16> to vector<8x8xbf16>
    %38 = vector.shape_cast %34 : vector<8x8xbf16> to vector<1x8x8xbf16>
    tpu.vector_store %arg15[%c0_14, %35, %c0_15], %38 {strides = array<i32>} : memref<4x8x8xbf16, #tpu.memory_space<vmem>>, vector<1x8x8xbf16>,
    %39 = vector.extract_strided_slice %33 {offsets = [0, 32], sizes = [8, 8], strides = [1, 1]} : vector<8x96xbf16> to vector<8x8xbf16>
    %c0_16 = arith.constant 0 : index
    %40 = arith.index_cast %1 : i32 to index
    %c0_17 = arith.constant 0 : index
    %41 = vector.load %arg16[%c0_16, %40, %c0_17] : memref<4x8x8xbf16, #tpu.memory_space<vmem>>, vector<1x8x8xbf16>
    %42 = vector.shape_cast %41 : vector<1x8x8xbf16> to vector<8x8xbf16>
    %43 = vector.shape_cast %39 : vector<8x8xbf16> to vector<1x8x8xbf16>
    tpu.vector_store %arg16[%c0_16, %40, %c0_17], %43 {strides = array<i32>} : memref<4x8x8xbf16, #tpu.memory_space<vmem>>, vector<1x8x8xbf16>,
    %44 = vector.extract_strided_slice %33 {offsets = [0, 64], sizes = [8, 8], strides = [1, 1]} : vector<8x96xbf16> to vector<8x8xbf16>
    %c0_18 = arith.constant 0 : index
    %45 = arith.index_cast %1 : i32 to index
    %c0_19 = arith.constant 0 : index
    %46 = vector.load %arg17[%c0_18, %45, %c0_19] : memref<4x8x8xbf16, #tpu.memory_space<vmem>>, vector<1x8x8xbf16>
    %47 = vector.shape_cast %46 : vector<1x8x8xbf16> to vector<8x8xbf16>
    %48 = vector.shape_cast %44 : vector<8x8xbf16> to vector<1x8x8xbf16>
    tpu.vector_store %arg17[%c0_18, %45, %c0_19], %48 {strides = array<i32>} : memref<4x8x8xbf16, #tpu.memory_space<vmem>>, vector<1x8x8xbf16>,
    %49 = vector.extract_strided_slice %33 {offsets = [0, 8], sizes = [8, 8], strides = [1, 1]} : vector<8x96xbf16> to vector<8x8xbf16>
    %c1 = arith.constant 1 : index
    %50 = arith.index_cast %1 : i32 to index
    %c0_20 = arith.constant 0 : index
    %51 = vector.load %arg15[%c1, %50, %c0_20] : memref<4x8x8xbf16, #tpu.memory_space<vmem>>, vector<1x8x8xbf16>
    %52 = vector.shape_cast %51 : vector<1x8x8xbf16> to vector<8x8xbf16>
    %53 = vector.shape_cast %49 : vector<8x8xbf16> to vector<1x8x8xbf16>
    tpu.vector_store %arg15[%c1, %50, %c0_20], %53 {strides = array<i32>} : memref<4x8x8xbf16, #tpu.memory_space<vmem>>, vector<1x8x8xbf16>,
    %54 = vector.extract_strided_slice %33 {offsets = [0, 40], sizes = [8, 8], strides = [1, 1]} : vector<8x96xbf16> to vector<8x8xbf16>
    %c1_21 = arith.constant 1 : index
    %55 = arith.index_cast %1 : i32 to index
    %c0_22 = arith.constant 0 : index
    %56 = vector.load %arg16[%c1_21, %55, %c0_22] : memref<4x8x8xbf16, #tpu.memory_space<vmem>>, vector<1x8x8xbf16>
    %57 = vector.shape_cast %56 : vector<1x8x8xbf16> to vector<8x8xbf16>
    %58 = vector.shape_cast %54 : vector<8x8xbf16> to vector<1x8x8xbf16>
    tpu.vector_store %arg16[%c1_21, %55, %c0_22], %58 {strides = array<i32>} : memref<4x8x8xbf16, #tpu.memory_space<vmem>>, vector<1x8x8xbf16>,
    %59 = vector.extract_strided_slice %33 {offsets = [0, 72], sizes = [8, 8], strides = [1, 1]} : vector<8x96xbf16> to vector<8x8xbf16>
    %c1_23 = arith.constant 1 : index
    %60 = arith.index_cast %1 : i32 to index
    %c0_24 = arith.constant 0 : index
    %61 = vector.load %arg17[%c1_23, %60, %c0_24] : memref<4x8x8xbf16, #tpu.memory_space<vmem>>, vector<1x8x8xbf16>
    %62 = vector.shape_cast %61 : vector<1x8x8xbf16> to vector<8x8xbf16>
    %63 = vector.shape_cast %59 : vector<8x8xbf16> to vector<1x8x8xbf16>
    tpu.vector_store %arg17[%c1_23, %60, %c0_24], %63 {strides = array<i32>} : memref<4x8x8xbf16, #tpu.memory_space<vmem>>, vector<1x8x8xbf16>,
    %64 = vector.extract_strided_slice %33 {offsets = [0, 16], sizes = [8, 8], strides = [1, 1]} : vector<8x96xbf16> to vector<8x8xbf16>
    %c2 = arith.constant 2 : index
    %65 = arith.index_cast %1 : i32 to index
    %c0_25 = arith.constant 0 : index
    %66 = vector.load %arg15[%c2, %65, %c0_25] : memref<4x8x8xbf16, #tpu.memory_space<vmem>>, vector<1x8x8xbf16>
    %67 = vector.shape_cast %66 : vector<1x8x8xbf16> to vector<8x8xbf16>
    %68 = vector.shape_cast %64 : vector<8x8xbf16> to vector<1x8x8xbf16>
    tpu.vector_store %arg15[%c2, %65, %c0_25], %68 {strides = array<i32>} : memref<4x8x8xbf16, #tpu.memory_space<vmem>>, vector<1x8x8xbf16>,
    %69 = vector.extract_strided_slice %33 {offsets = [0, 48], sizes = [8, 8], strides = [1, 1]} : vector<8x96xbf16> to vector<8x8xbf16>
    %c2_26 = arith.constant 2 : index
    %70 = arith.index_cast %1 : i32 to index
    %c0_27 = arith.constant 0 : index
    %71 = vector.load %arg16[%c2_26, %70, %c0_27] : memref<4x8x8xbf16, #tpu.memory_space<vmem>>, vector<1x8x8xbf16>
    %72 = vector.shape_cast %71 : vector<1x8x8xbf16> to vector<8x8xbf16>
    %73 = vector.shape_cast %69 : vector<8x8xbf16> to vector<1x8x8xbf16>
    tpu.vector_store %arg16[%c2_26, %70, %c0_27], %73 {strides = array<i32>} : memref<4x8x8xbf16, #tpu.memory_space<vmem>>, vector<1x8x8xbf16>,
    %74 = vector.extract_strided_slice %33 {offsets = [0, 80], sizes = [8, 8], strides = [1, 1]} : vector<8x96xbf16> to vector<8x8xbf16>
    %c2_28 = arith.constant 2 : index
    %75 = arith.index_cast %1 : i32 to index
    %c0_29 = arith.constant 0 : index
    %76 = vector.load %arg17[%c2_28, %75, %c0_29] : memref<4x8x8xbf16, #tpu.memory_space<vmem>>, vector<1x8x8xbf16>
    %77 = vector.shape_cast %76 : vector<1x8x8xbf16> to vector<8x8xbf16>
    %78 = vector.shape_cast %74 : vector<8x8xbf16> to vector<1x8x8xbf16>
    tpu.vector_store %arg17[%c2_28, %75, %c0_29], %78 {strides = array<i32>} : memref<4x8x8xbf16, #tpu.memory_space<vmem>>, vector<1x8x8xbf16>,
    %79 = vector.extract_strided_slice %33 {offsets = [0, 24], sizes = [8, 8], strides = [1, 1]} : vector<8x96xbf16> to vector<8x8xbf16>
    %c3 = arith.constant 3 : index
    %80 = arith.index_cast %1 : i32 to index
    %c0_30 = arith.constant 0 : index
    %81 = vector.load %arg15[%c3, %80, %c0_30] : memref<4x8x8xbf16, #tpu.memory_space<vmem>>, vector<1x8x8xbf16>
    %82 = vector.shape_cast %81 : vector<1x8x8xbf16> to vector<8x8xbf16>
    %83 = vector.shape_cast %79 : vector<8x8xbf16> to vector<1x8x8xbf16>
    tpu.vector_store %arg15[%c3, %80, %c0_30], %83 {strides = array<i32>} : memref<4x8x8xbf16, #tpu.memory_space<vmem>>, vector<1x8x8xbf16>,
    %84 = vector.extract_strided_slice %33 {offsets = [0, 56], sizes = [8, 8], strides = [1, 1]} : vector<8x96xbf16> to vector<8x8xbf16>
    %c3_31 = arith.constant 3 : index
    %85 = arith.index_cast %1 : i32 to index
    %c0_32 = arith.constant 0 : index
    %86 = vector.load %arg16[%c3_31, %85, %c0_32] : memref<4x8x8xbf16, #tpu.memory_space<vmem>>, vector<1x8x8xbf16>
    %87 = vector.shape_cast %86 : vector<1x8x8xbf16> to vector<8x8xbf16>
    %88 = vector.shape_cast %84 : vector<8x8xbf16> to vector<1x8x8xbf16>
    tpu.vector_store %arg16[%c3_31, %85, %c0_32], %88 {strides = array<i32>} : memref<4x8x8xbf16, #tpu.memory_space<vmem>>, vector<1x8x8xbf16>,
    %89 = vector.extract_strided_slice %33 {offsets = [0, 88], sizes = [8, 8], strides = [1, 1]} : vector<8x96xbf16> to vector<8x8xbf16>
    %c3_33 = arith.constant 3 : index
    %90 = arith.index_cast %1 : i32 to index
    %c0_34 = arith.constant 0 : index
    %91 = vector.load %arg17[%c3_33, %90, %c0_34] : memref<4x8x8xbf16, #tpu.memory_space<vmem>>, vector<1x8x8xbf16>
    %92 = vector.shape_cast %91 : vector<1x8x8xbf16> to vector<8x8xbf16>
    %93 = vector.shape_cast %89 : vector<8x8xbf16> to vector<1x8x8xbf16>
    tpu.vector_store %arg17[%c3_33, %90, %c0_34], %93 {strides = array<i32>} : memref<4x8x8xbf16, #tpu.memory_space<vmem>>, vector<1x8x8xbf16>,
    %c1_i32 = arith.constant 1 : i32
    %c0_i32_35 = arith.constant 0 : i32
    %c8_i32_36 = arith.constant 8 : i32
    %94 = arith.muli %c0_i32_35, %c8_i32_36 : i32
    %95 = tpu.assume_multiple %94, 8 : i32
    %c0_37 = arith.constant 0 : index
    %96 = arith.index_cast %95 : i32 to index
    %c0_38 = arith.constant 0 : index
    %97 = vector.load %arg15[%c0_37, %96, %c0_38] : memref<4x8x8xbf16, #tpu.memory_space<vmem>>, vector<4x8x8xbf16>
    %c0_39 = arith.constant 0 : index
    %c0_40 = arith.constant 0 : index
    %c0_41 = arith.constant 0 : index
    %98 = vector.load %arg16[%c0_39, %c0_40, %c0_41] : memref<4x8x8xbf16, #tpu.memory_space<vmem>>, vector<4x8x8xbf16>
    "tpu.trace_start"() <{level = 10 : i32, message = "hqd,hkd->hqk"}> : () -> ()
    %cst_42 = arith.constant dense<0.000000e+00> : vector<4x8x8xf32>
    %99 = tpu.matmul %97, %98, %cst_42 {dimension_numbers = #tpu.dot_dimension_numbers<[2], [2], [1], [1], [0, 0, 0, 1, 1, 1], [0], [0]>} : vector<4x8x8xbf16>, vector<4x8x8xbf16>, vector<4x8x8xf32> -> vector<4x8x8xf32>
    "tpu.trace_stop"() : () -> ()
    %cst_43 = arith.constant dense<0xFF800000> : vector<4x8xf32>
    %100 = vector.multi_reduction <maximumf>, %99, %cst_43 [2] : vector<4x8x8xf32> to vector<4x8xf32>
    %101 = vector.shape_cast %100 : vector<4x8xf32> to vector<4x8x1xf32>
    %102 = vector.broadcast %101 : vector<4x8x1xf32> to vector<4x8x8xf32>
    %103 = arith.subf %99, %102 : vector<4x8x8xf32>
    %104 = math.exp %103 : vector<4x8x8xf32>
    %cst_44 = arith.constant dense<0.000000e+00> : vector<4x8xf32>
    %105 = vector.multi_reduction <add>, %104, %cst_44 [2] : vector<4x8x8xf32> to vector<4x8xf32>
    %106 = vector.shape_cast %105 : vector<4x8xf32> to vector<4x8x1xf32>
    %107 = tpu.reciprocal %106 {approx = true} : vector<4x8x1xf32> -> vector<4x8x1xf32>
    %108 = vector.broadcast %107 : vector<4x8x1xf32> to vector<4x8x8xf32>
    %109 = arith.mulf %104, %108 : vector<4x8x8xf32>
    %110 = arith.truncf %109 : vector<4x8x8xf32> to vector<4x8x8xbf16>
    %c0_45 = arith.constant 0 : index
    %c0_46 = arith.constant 0 : index
    %c0_47 = arith.constant 0 : index
    %111 = vector.load %arg17[%c0_45, %c0_46, %c0_47] : memref<4x8x8xbf16, #tpu.memory_space<vmem>>, vector<4x8x8xbf16>
    "tpu.trace_start"() <{level = 10 : i32, message = "hqk,hkd->hqd"}> : () -> ()
    %cst_48 = arith.constant dense<0.000000e+00> : vector<4x8x8xf32>
    %112 = tpu.matmul %110, %111, %cst_48 {dimension_numbers = #tpu.dot_dimension_numbers<[2], [1], [1], [2], [0, 0, 0, 1, 1, 2], [0], [0]>} : vector<4x8x8xbf16>, vector<4x8x8xbf16>, vector<4x8x8xf32> -> vector<4x8x8xf32>
    "tpu.trace_stop"() : () -> ()
    %113 = vector.extract_strided_slice %112 {offsets = [0, 0, 0], sizes = [1, 8, 8], strides = [1, 1, 1]} : vector<4x8x8xf32> to vector<1x8x8xf32>
    %114 = vector.shape_cast %113 : vector<1x8x8xf32> to vector<8x8xf32>
    %115 = arith.truncf %114 : vector<8x8xf32> to vector<8x8xbf16>
    %c0_49 = arith.constant 0 : index
    %c0_50 = arith.constant 0 : index
    %116 = vector.load %arg18[%c0_49, %c0_50] : memref<8x32xbf16, #tpu.memory_space<vmem>>, vector<8x8xbf16>
    tpu.vector_store %arg18[%c0_49, %c0_50], %115 {strides = array<i32>} : memref<8x32xbf16, #tpu.memory_space<vmem>>, vector<8x8xbf16>,
    %117 = vector.extract_strided_slice %112 {offsets = [1, 0, 0], sizes = [1, 8, 8], strides = [1, 1, 1]} : vector<4x8x8xf32> to vector<1x8x8xf32>
    %118 = vector.shape_cast %117 : vector<1x8x8xf32> to vector<8x8xf32>
    %119 = arith.truncf %118 : vector<8x8xf32> to vector<8x8xbf16>
    %c0_51 = arith.constant 0 : index
    %c8 = arith.constant 8 : index
    %120 = vector.load %arg18[%c0_51, %c8] : memref<8x32xbf16, #tpu.memory_space<vmem>>, vector<8x8xbf16>
    tpu.vector_store %arg18[%c0_51, %c8], %119 {strides = array<i32>} : memref<8x32xbf16, #tpu.memory_space<vmem>>, vector<8x8xbf16>,
    %121 = vector.extract_strided_slice %112 {offsets = [2, 0, 0], sizes = [1, 8, 8], strides = [1, 1, 1]} : vector<4x8x8xf32> to vector<1x8x8xf32>
    %122 = vector.shape_cast %121 : vector<1x8x8xf32> to vector<8x8xf32>
    %123 = arith.truncf %122 : vector<8x8xf32> to vector<8x8xbf16>
    %c0_52 = arith.constant 0 : index
    %c16 = arith.constant 16 : index
    %124 = vector.load %arg18[%c0_52, %c16] : memref<8x32xbf16, #tpu.memory_space<vmem>>, vector<8x8xbf16>
    tpu.vector_store %arg18[%c0_52, %c16], %123 {strides = array<i32>} : memref<8x32xbf16, #tpu.memory_space<vmem>>, vector<8x8xbf16>,
    %125 = vector.extract_strided_slice %112 {offsets = [3, 0, 0], sizes = [1, 8, 8], strides = [1, 1, 1]} : vector<4x8x8xf32> to vector<1x8x8xf32>
    %126 = vector.shape_cast %125 : vector<1x8x8xf32> to vector<8x8xf32>
    %127 = arith.truncf %126 : vector<8x8xf32> to vector<8x8xbf16>
    %c0_53 = arith.constant 0 : index
    %c24 = arith.constant 24 : index
    %128 = vector.load %arg18[%c0_53, %c24] : memref<8x32xbf16, #tpu.memory_space<vmem>>, vector<8x8xbf16>
    tpu.vector_store %arg18[%c0_53, %c24], %127 {strides = array<i32>} : memref<8x32xbf16, #tpu.memory_space<vmem>>, vector<8x8xbf16>,
    %c0_54 = arith.constant 0 : index
    %c0_55 = arith.constant 0 : index
    %129 = vector.load %arg18[%c0_54, %c0_55] : memref<8x32xbf16, #tpu.memory_space<vmem>>, vector<8x32xbf16>
    %c0_56 = arith.constant 0 : index
    %c0_57 = arith.constant 0 : index
    %130 = vector.load %arg6[%c0_56, %c0_57] : memref<32x32xbf16, #tpu.memory_space<vmem>>, vector<32x32xbf16>
    %cst_58 = arith.constant dense<0.000000e+00> : vector<8x32xf32>
    %131 = tpu.matmul %129, %130, %cst_58 {dimension_numbers = #tpu.dot_dimension_numbers<[1], [0], [0], [1], [0, 0, 1, 1], [], []>} : vector<8x32xbf16>, vector<32x32xbf16>, vector<8x32xf32> -> vector<8x32xf32>
    %c0_59 = arith.constant 0 : index
    %c0_60 = arith.constant 0 : index
    %132 = vector.load %arg7[%c0_59, %c0_60] : memref<1x32xf32, #tpu.memory_space<vmem>>, vector<1x32xf32>
    %133 = vector.broadcast %132 : vector<1x32xf32> to vector<8x32xf32>
    %134 = arith.addf %131, %133 : vector<8x32xf32>
    %c0_61 = arith.constant 0 : index
    %135 = arith.index_cast %95 : i32 to index
    %c0_62 = arith.constant 0 : index
    %136 = vector.load %arg1[%c0_61, %135, %c0_62] : memref<1x8x32xf32, #tpu.memory_space<vmem>>, vector<1x8x32xf32>
    %137 = vector.shape_cast %136 : vector<1x8x32xf32> to vector<8x32xf32>
    %138 = arith.addf %137, %134 : vector<8x32xf32>
    %c0_63 = arith.constant 0 : index
    %c0_64 = arith.constant 0 : index
    %139 = vector.load %arg8[%c0_63, %c0_64] : memref<1x32xf32, #tpu.memory_space<vmem>>, vector<1x32xf32>
    %c0_65 = arith.constant 0 : index
    %c0_66 = arith.constant 0 : index
    %140 = vector.load %arg9[%c0_65, %c0_66] : memref<1x32xf32, #tpu.memory_space<vmem>>, vector<1x32xf32>
    %cst_67 = arith.constant dense<0.000000e+00> : vector<8xf32>
    %141 = vector.multi_reduction <add>, %138, %cst_67 [1] : vector<8x32xf32> to vector<8xf32>
    %142 = vector.shape_cast %141 : vector<8xf32> to vector<8x1xf32>
    %cst_68 = arith.constant 3.200000e+01 : f32
    %143 = vector.broadcast %cst_68 : f32 to vector<8x1xf32>
    %144 = arith.divf %142, %143 : vector<8x1xf32>
    %145 = vector.broadcast %144 : vector<8x1xf32> to vector<8x32xf32>
    %146 = arith.subf %138, %145 : vector<8x32xf32>
    %147 = arith.mulf %146, %146 : vector<8x32xf32>
    %cst_69 = arith.constant dense<0.000000e+00> : vector<8xf32>
    %148 = vector.multi_reduction <add>, %147, %cst_69 [1] : vector<8x32xf32> to vector<8xf32>
    %149 = vector.shape_cast %148 : vector<8xf32> to vector<8x1xf32>
    %cst_70 = arith.constant 3.200000e+01 : f32
    %150 = vector.broadcast %cst_70 : f32 to vector<8x1xf32>
    %151 = arith.divf %149, %150 : vector<8x1xf32>
    %cst_71 = arith.constant 9.99999974E-6 : f32
    %152 = vector.broadcast %cst_71 : f32 to vector<8x1xf32>
    %153 = arith.addf %151, %152 : vector<8x1xf32>
    %154 = math.rsqrt %153 : vector<8x1xf32>
    %155 = vector.broadcast %154 : vector<8x1xf32> to vector<8x32xf32>
    %156 = arith.mulf %146, %155 : vector<8x32xf32>
    %157 = vector.broadcast %139 : vector<1x32xf32> to vector<8x32xf32>
    %158 = arith.mulf %156, %157 : vector<8x32xf32>
    %159 = vector.broadcast %140 : vector<1x32xf32> to vector<8x32xf32>
    %160 = arith.addf %158, %159 : vector<8x32xf32>
    %161 = arith.truncf %160 : vector<8x32xf32> to vector<8x32xbf16>
    %c0_72 = arith.constant 0 : index
    %c0_73 = arith.constant 0 : index
    %162 = vector.load %arg10[%c0_72, %c0_73] : memref<32x128xbf16, #tpu.memory_space<vmem>>, vector<32x128xbf16>
    %cst_74 = arith.constant dense<0.000000e+00> : vector<8x128xf32>
    %163 = tpu.matmul %161, %162, %cst_74 {dimension_numbers = #tpu.dot_dimension_numbers<[1], [0], [0], [1], [0, 0, 1, 1], [], []>} : vector<8x32xbf16>, vector<32x128xbf16>, vector<8x128xf32> -> vector<8x128xf32>
    %c0_75 = arith.constant 0 : index
    %c0_76 = arith.constant 0 : index
    %164 = vector.load %arg11[%c0_75, %c0_76] : memref<1x128xf32, #tpu.memory_space<vmem>>, vector<1x128xf32>
    %165 = vector.broadcast %164 : vector<1x128xf32> to vector<8x128xf32>
    %166 = arith.addf %163, %165 : vector<8x128xf32>
    %cst_77 = arith.constant 5.000000e-01 : f32
    %167 = vector.broadcast %cst_77 : f32 to vector<8x128xf32>
    %168 = arith.mulf %167, %166 : vector<8x128xf32>
    %cst_78 = arith.constant 0.707106769 : f32
    %169 = vector.broadcast %cst_78 : f32 to vector<8x128xf32>
    %170 = arith.mulf %166, %169 : vector<8x128xf32>
    %171 = math.erf %170 : vector<8x128xf32>
    %cst_79 = arith.constant 1.000000e+00 : f32
    %172 = vector.broadcast %cst_79 : f32 to vector<8x128xf32>
    %173 = arith.addf %172, %171 : vector<8x128xf32>
    %174 = arith.mulf %168, %173 : vector<8x128xf32>
    %175 = arith.truncf %174 : vector<8x128xf32> to vector<8x128xbf16>
    %c0_80 = arith.constant 0 : index
    %c0_81 = arith.constant 0 : index
    %176 = vector.load %arg12[%c0_80, %c0_81] : memref<128x32xbf16, #tpu.memory_space<vmem>>, vector<128x32xbf16>
    %cst_82 = arith.constant dense<0.000000e+00> : vector<8x32xf32>
    %177 = tpu.matmul %175, %176, %cst_82 {dimension_numbers = #tpu.dot_dimension_numbers<[1], [0], [0], [1], [0, 0, 1, 1], [], []>} : vector<8x128xbf16>, vector<128x32xbf16>, vector<8x32xf32> -> vector<8x32xf32>
    %c0_83 = arith.constant 0 : index
    %c0_84 = arith.constant 0 : index
    %178 = vector.load %arg13[%c0_83, %c0_84] : memref<1x32xf32, #tpu.memory_space<vmem>>, vector<1x32xf32>
    %179 = vector.broadcast %178 : vector<1x32xf32> to vector<8x32xf32>
    %180 = arith.addf %177, %179 : vector<8x32xf32>
    %181 = arith.addf %138, %180 : vector<8x32xf32>
    %c0_85 = arith.constant 0 : index
    %182 = arith.index_cast %95 : i32 to index
    %c0_86 = arith.constant 0 : index
    %183 = vector.load %arg14[%c0_85, %182, %c0_86] : memref<1x8x32xf32, #tpu.memory_space<vmem>>, vector<1x8x32xf32>
    %184 = vector.shape_cast %183 : vector<1x8x32xf32> to vector<8x32xf32>
    %185 = vector.shape_cast %181 : vector<8x32xf32> to vector<1x8x32xf32>
    tpu.vector_store %arg14[%c0_85, %182, %c0_86], %185 {strides = array<i32>} : memref<1x8x32xf32, #tpu.memory_space<vmem>>, vector<1x8x32xf32>,
    %c1_i32_87 = arith.constant 1 : i32
    return
  }
  func.func @transform_0(%arg0: i32) -> (i32, i32, i32) {
    %c0_i32 = arith.constant 0 : i32
    %c0_i32_0 = arith.constant 0 : i32
    %c0_i32_1 = arith.constant 0 : i32
    return %arg0, %c0_i32, %c0_i32_0 : i32, i32, i32
  }
  func.func @transform_1(%arg0: i32) -> (i32, i32) {
    %c0_i32 = arith.constant 0 : i32
    %c0_i32_0 = arith.constant 0 : i32
    %c0_i32_1 = arith.constant 0 : i32
    return %c0_i32, %c0_i32_0 : i32, i32
  }
  func.func @transform_2(%arg0: i32) -> (i32, i32) {
    %c0_i32 = arith.constant 0 : i32
    %c0_i32_0 = arith.constant 0 : i32
    %c0_i32_1 = arith.constant 0 : i32
    return %c0_i32, %c0_i32_0 : i32, i32
  }
  func.func @transform_3(%arg0: i32) -> (i32, i32) {
    %c0_i32 = arith.constant 0 : i32
    %c0_i32_0 = arith.constant 0 : i32
    %c0_i32_1 = arith.constant 0 : i32
    return %c0_i32, %c0_i32_0 : i32, i32
  }
  func.func @transform_4(%arg0: i32) -> (i32, i32) {
    %c0_i32 = arith.constant 0 : i32
    %c0_i32_0 = arith.constant 0 : i32
    %c0_i32_1 = arith.constant 0 : i32
    return %c0_i32, %c0_i32_0 : i32, i32
  }
  func.func @transform_5(%arg0: i32) -> (i32, i32) {
    %c0_i32 = arith.constant 0 : i32
    %c0_i32_0 = arith.constant 0 : i32
    %c0_i32_1 = arith.constant 0 : i32
    return %c0_i32, %c0_i32_0 : i32, i32
  }
  func.func @transform_6(%arg0: i32) -> (i32, i32) {
    %c0_i32 = arith.constant 0 : i32
    %c0_i32_0 = arith.constant 0 : i32
    %c0_i32_1 = arith.constant 0 : i32
    return %c0_i32, %c0_i32_0 : i32, i32
  }
  func.func @transform_7(%arg0: i32) -> (i32, i32) {
    %c0_i32 = arith.constant 0 : i32
    %c0_i32_0 = arith.constant 0 : i32
    %c0_i32_1 = arith.constant 0 : i32
    return %c0_i32, %c0_i32_0 : i32, i32
  }
  func.func @transform_8(%arg0: i32) -> (i32, i32) {
    %c0_i32 = arith.constant 0 : i32
    %c0_i32_0 = arith.constant 0 : i32
    %c0_i32_1 = arith.constant 0 : i32
    return %c0_i32, %c0_i32_0 : i32, i32
  }
  func.func @transform_9(%arg0: i32) -> (i32, i32) {
    %c0_i32 = arith.constant 0 : i32
    %c0_i32_0 = arith.constant 0 : i32
    %c0_i32_1 = arith.constant 0 : i32
    return %c0_i32, %c0_i32_0 : i32, i32
  }
  func.func @transform_10(%arg0: i32) -> (i32, i32) {
    %c0_i32 = arith.constant 0 : i32
    %c0_i32_0 = arith.constant 0 : i32
    %c0_i32_1 = arith.constant 0 : i32
    return %c0_i32, %c0_i32_0 : i32, i32
  }
  func.func @transform_11(%arg0: i32) -> (i32, i32) {
    %c0_i32 = arith.constant 0 : i32
    %c0_i32_0 = arith.constant 0 : i32
    %c0_i32_1 = arith.constant 0 : i32
    return %c0_i32, %c0_i32_0 : i32, i32
  }
  func.func @transform_12(%arg0: i32) -> (i32, i32) {
    %c0_i32 = arith.constant 0 : i32
    %c0_i32_0 = arith.constant 0 : i32
    %c0_i32_1 = arith.constant 0 : i32
    return %c0_i32, %c0_i32_0 : i32, i32
  }
  func.func @transform_13(%arg0: i32) -> (i32, i32, i32) {
    %c0_i32 = arith.constant 0 : i32
    %c0_i32_0 = arith.constant 0 : i32
    %c0_i32_1 = arith.constant 0 : i32
    return %arg0, %c0_i32, %c0_i32_0 : i32, i32, i32
  }
}

module attributes {stable_mosaic.version = 11 : i64} {
  func.func @kernel(%arg0: i32, %arg1: memref<1x8x32xf32, #tpu.memory_space<vmem>>, %arg2: memref<1x32xf32, #tpu.memory_space<vmem>>, %arg3: memref<1x32xf32, #tpu.memory_space<vmem>>, %arg4: memref<32x96xbf16, #tpu.memory_space<vmem>>, %arg5: memref<1x96xf32, #tpu.memory_space<vmem>>, %arg6: memref<32x32xbf16, #tpu.memory_space<vmem>>, %arg7: memref<1x32xf32, #tpu.memory_space<vmem>>, %arg8: memref<1x32xf32, #tpu.memory_space<vmem>>, %arg9: memref<1x32xf32, #tpu.memory_space<vmem>>, %arg10: memref<32x128xbf16, #tpu.memory_space<vmem>>, %arg11: memref<1x128xf32, #tpu.memory_space<vmem>>, %arg12: memref<128x32xbf16, #tpu.memory_space<vmem>>, %arg13: memref<1x32xf32, #tpu.memory_space<vmem>>, %arg14: memref<1x8x32xf32, #tpu.memory_space<vmem>>, %arg15: memref<4x8x8xbf16, #tpu.memory_space<vmem>>, %arg16: memref<4x8x8xbf16, #tpu.memory_space<vmem>>, %arg17: memref<4x8x8xbf16, #tpu.memory_space<vmem>>, %arg18: memref<8x32xbf16, #tpu.memory_space<vmem>>) attributes {dimension_semantics = [#tpu.dimension_semantics<parallel>], iteration_bounds = array<i64: 2>, scalar_prefetch = 0 : i64, scratch_operands = 4 : i64, tpu.core_type = #tpu.core_type<tc>, window_params = [{transform_indices = @transform_0, window_bounds = array<i64: 1, 8, 32>}, {pipeline_mode = #tpu.pipeline_mode<synchronous>, transform_indices = @transform_1, window_bounds = array<i64: 1, 32>}, {pipeline_mode = #tpu.pipeline_mode<synchronous>, transform_indices = @transform_2, window_bounds = array<i64: 1, 32>}, {pipeline_mode = #tpu.pipeline_mode<synchronous>, transform_indices = @transform_3, window_bounds = array<i64: 32, 96>}, {pipeline_mode = #tpu.pipeline_mode<synchronous>, transform_indices = @transform_4, window_bounds = array<i64: 1, 96>}, {pipeline_mode = #tpu.pipeline_mode<synchronous>, transform_indices = @transform_5, window_bounds = array<i64: 32, 32>}, {pipeline_mode = #tpu.pipeline_mode<synchronous>, transform_indices = @transform_6, window_bounds = array<i64: 1, 32>}, {pipeline_mode = #tpu.pipeline_mode<synchronous>, transform_indices = @transform_7, window_bounds = array<i64: 1, 32>}, {pipeline_mode = #tpu.pipeline_mode<synchronous>, transform_indices = @transform_8, window_bounds = array<i64: 1, 32>}, {pipeline_mode = #tpu.pipeline_mode<synchronous>, transform_indices = @transform_9, window_bounds = array<i64: 32, 128>}, {pipeline_mode = #tpu.pipeline_mode<synchronous>, transform_indices = @transform_10, window_bounds = array<i64: 1, 128>}, {pipeline_mode = #tpu.pipeline_mode<synchronous>, transform_indices = @transform_11, window_bounds = array<i64: 128, 32>}, {pipeline_mode = #tpu.pipeline_mode<synchronous>, transform_indices = @transform_12, window_bounds = array<i64: 1, 32>}, {transform_indices = @transform_13, window_bounds = array<i64: 1, 8, 32>}]} {
    %c0_i32 = arith.constant 0 : i32
    %c8_i32 = arith.constant 8 : i32
    %0 = arith.muli %c0_i32, %c8_i32 : i32
    %1 = tpu.assume_multiple %0, 8 : i32
    %c0 = arith.constant 0 : index
    %2 = arith.index_cast %1 : i32 to index
    %c0_0 = arith.constant 0 : index
    %3 = vector.load %arg1[%c0, %2, %c0_0] : memref<1x8x32xf32, #tpu.memory_space<vmem>>, vector<1x8x32xf32>
    %4 = vector.shape_cast %3 : vector<1x8x32xf32> to vector<8x32xf32>
    %c0_1 = arith.constant 0 : index
    %c0_2 = arith.constant 0 : index
    %5 = vector.load %arg2[%c0_1, %c0_2] : memref<1x32xf32, #tpu.memory_space<vmem>>, vector<1x32xf32>
    %c0_3 = arith.constant 0 : index
    %c0_4 = arith.constant 0 : index
    %6 = vector.load %arg3[%c0_3, %c0_4] : memref<1x32xf32, #tpu.memory_space<vmem>>, vector<1x32xf32>
    %cst = arith.constant dense<0.000000e+00> : vector<8xf32>
    %7 = vector.multi_reduction <add>, %4, %cst [1] : vector<8x32xf32> to vector<8xf32>
    %8 = vector.shape_cast %7 : vector<8xf32> to vector<8x1xf32>
    %cst_5 = arith.constant 3.200000e+01 : f32
    %9 = vector.broadcast %cst_5 : f32 to vector<8x1xf32>
    %10 = arith.divf %8, %9 : vector<8x1xf32>
    %11 = vector.broadcast %10 : vector<8x1xf32> to vector<8x32xf32>
    %12 = arith.subf %4, %11 : vector<8x32xf32>
    %13 = arith.mulf %12, %12 : vector<8x32xf32>
    %cst_6 = arith.constant dense<0.000000e+00> : vector<8xf32>
    %14 = vector.multi_reduction <add>, %13, %cst_6 [1] : vector<8x32xf32> to vector<8xf32>
    %15 = vector.shape_cast %14 : vector<8xf32> to vector<8x1xf32>
    %cst_7 = arith.constant 3.200000e+01 : f32
    %16 = vector.broadcast %cst_7 : f32 to vector<8x1xf32>
    %17 = arith.divf %15, %16 : vector<8x1xf32>
    %cst_8 = arith.constant 9.99999974E-6 : f32
    %18 = vector.broadcast %cst_8 : f32 to vector<8x1xf32>
    %19 = arith.addf %17, %18 : vector<8x1xf32>
    %20 = math.rsqrt %19 : vector<8x1xf32>
    %21 = vector.broadcast %20 : vector<8x1xf32> to vector<8x32xf32>
    %22 = arith.mulf %12, %21 : vector<8x32xf32>
    %23 = vector.broadcast %5 : vector<1x32xf32> to vector<8x32xf32>
    %24 = arith.mulf %22, %23 : vector<8x32xf32>
    %25 = vector.broadcast %6 : vector<1x32xf32> to vector<8x32xf32>
    %26 = arith.addf %24, %25 : vector<8x32xf32>
    %27 = arith.truncf %26 : vector<8x32xf32> to vector<8x32xbf16>
    %c0_9 = arith.constant 0 : index
    %c0_10 = arith.constant 0 : index
    %28 = vector.load %arg4[%c0_9, %c0_10] : memref<32x96xbf16, #tpu.memory_space<vmem>>, vector<32x96xbf16>
    %cst_11 = arith.constant dense<0.000000e+00> : vector<8x96xf32>
    %29 = tpu.matmul %27, %28, %cst_11 {dimension_numbers = #tpu.dot_dimension_numbers<[1], [0], [0], [1], [0, 0, 1, 1], [], []>} : vector<8x32xbf16>, vector<32x96xbf16>, vector<8x96xf32> -> vector<8x96xf32>
    %c0_12 = arith.constant 0 : index
    %c0_13 = arith.constant 0 : index
    %30 = vector.load %arg5[%c0_12, %c0_13] : memref<1x96xf32, #tpu.memory_space<vmem>>, vector<1x96xf32>
    %31 = vector.broadcast %30 : vector<1x96xf32> to vector<8x96xf32>
    %32 = arith.addf %29, %31 : vector<8x96xf32>
    %33 = arith.truncf %32 : vector<8x96xf32> to vector<8x96xbf16>
    %34 = vector.extract_strided_slice %33 {offsets = [0, 0], sizes = [8, 8], strides = [1, 1]} : vector<8x96xbf16> to vector<8x8xbf16>
    %c0_14 = arith.constant 0 : index
    %35 = arith.index_cast %1 : i32 to index
    %c0_15 = arith.constant 0 : index
    %36 = vector.load %arg15[%c0_14, %35, %c0_15] : memref<4x8x8xbf16, #tpu.memory_space<vmem>>, vector<1x8x8xbf16>
    %37 = vector.shape_cast %36 : vector<1x8x8xbf16> to vector<8x8xbf16>
    %38 = vector.shape_cast %34 : vector<8x8xbf16> to vector<1x8x8xbf16>
    tpu.vector_store %arg15[%c0_14, %35, %c0_15], %38 {strides = array<i32>} : memref<4x8x8xbf16, #tpu.memory_space<vmem>>, vector<1x8x8xbf16>,
    %39 = vector.extract_strided_slice %33 {offsets = [0, 32], sizes = [8, 8], strides = [1, 1]} : vector<8x96xbf16> to vector<8x8xbf16>
    %c0_16 = arith.constant 0 : index
    %40 = arith.index_cast %1 : i32 to index
    %c0_17 = arith.constant 0 : index
    %41 = vector.load %arg16[%c0_16, %40, %c0_17] : memref<4x8x8xbf16, #tpu.memory_space<vmem>>, vector<1x8x8xbf16>
    %42 = vector.shape_cast %41 : vector<1x8x8xbf16> to vector<8x8xbf16>
    %43 = vector.shape_cast %39 : vector<8x8xbf16> to vector<1x8x8xbf16>
    tpu.vector_store %arg16[%c0_16, %40, %c0_17], %43 {strides = array<i32>} : memref<4x8x8xbf16, #tpu.memory_space<vmem>>, vector<1x8x8xbf16>,
    %44 = vector.extract_strided_slice %33 {offsets = [0, 64], sizes = [8, 8], strides = [1, 1]} : vector<8x96xbf16> to vector<8x8xbf16>
    %c0_18 = arith.constant 0 : index
    %45 = arith.index_cast %1 : i32 to index
    %c0_19 = arith.constant 0 : index
    %46 = vector.load %arg17[%c0_18, %45, %c0_19] : memref<4x8x8xbf16, #tpu.memory_space<vmem>>, vector<1x8x8xbf16>
    %47 = vector.shape_cast %46 : vector<1x8x8xbf16> to vector<8x8xbf16>
    %48 = vector.shape_cast %44 : vector<8x8xbf16> to vector<1x8x8xbf16>
    tpu.vector_store %arg17[%c0_18, %45, %c0_19], %48 {strides = array<i32>} : memref<4x8x8xbf16, #tpu.memory_space<vmem>>, vector<1x8x8xbf16>,
    %49 = vector.extract_strided_slice %33 {offsets = [0, 8], sizes = [8, 8], strides = [1, 1]} : vector<8x96xbf16> to vector<8x8xbf16>
    %c1 = arith.constant 1 : index
    %50 = arith.index_cast %1 : i32 to index
    %c0_20 = arith.constant 0 : index
    %51 = vector.load %arg15[%c1, %50, %c0_20] : memref<4x8x8xbf16, #tpu.memory_space<vmem>>, vector<1x8x8xbf16>
    %52 = vector.shape_cast %51 : vector<1x8x8xbf16> to vector<8x8xbf16>
    %53 = vector.shape_cast %49 : vector<8x8xbf16> to vector<1x8x8xbf16>
    tpu.vector_store %arg15[%c1, %50, %c0_20], %53 {strides = array<i32>} : memref<4x8x8xbf16, #tpu.memory_space<vmem>>, vector<1x8x8xbf16>,
    %54 = vector.extract_strided_slice %33 {offsets = [0, 40], sizes = [8, 8], strides = [1, 1]} : vector<8x96xbf16> to vector<8x8xbf16>
    %c1_21 = arith.constant 1 : index
    %55 = arith.index_cast %1 : i32 to index
    %c0_22 = arith.constant 0 : index
    %56 = vector.load %arg16[%c1_21, %55, %c0_22] : memref<4x8x8xbf16, #tpu.memory_space<vmem>>, vector<1x8x8xbf16>
    %57 = vector.shape_cast %56 : vector<1x8x8xbf16> to vector<8x8xbf16>
    %58 = vector.shape_cast %54 : vector<8x8xbf16> to vector<1x8x8xbf16>
    tpu.vector_store %arg16[%c1_21, %55, %c0_22], %58 {strides = array<i32>} : memref<4x8x8xbf16, #tpu.memory_space<vmem>>, vector<1x8x8xbf16>,
    %59 = vector.extract_strided_slice %33 {offsets = [0, 72], sizes = [8, 8], strides = [1, 1]} : vector<8x96xbf16> to vector<8x8xbf16>
    %c1_23 = arith.constant 1 : index
    %60 = arith.index_cast %1 : i32 to index
    %c0_24 = arith.constant 0 : index
    %61 = vector.load %arg17[%c1_23, %60, %c0_24] : memref<4x8x8xbf16, #tpu.memory_space<vmem>>, vector<1x8x8xbf16>
    %62 = vector.shape_cast %61 : vector<1x8x8xbf16> to vector<8x8xbf16>
    %63 = vector.shape_cast %59 : vector<8x8xbf16> to vector<1x8x8xbf16>
    tpu.vector_store %arg17[%c1_23, %60, %c0_24], %63 {strides = array<i32>} : memref<4x8x8xbf16, #tpu.memory_space<vmem>>, vector<1x8x8xbf16>,
    %64 = vector.extract_strided_slice %33 {offsets = [0, 16], sizes = [8, 8], strides = [1, 1]} : vector<8x96xbf16> to vector<8x8xbf16>
    %c2 = arith.constant 2 : index
    %65 = arith.index_cast %1 : i32 to index
    %c0_25 = arith.constant 0 : index
    %66 = vector.load %arg15[%c2, %65, %c0_25] : memref<4x8x8xbf16, #tpu.memory_space<vmem>>, vector<1x8x8xbf16>
    %67 = vector.shape_cast %66 : vector<1x8x8xbf16> to vector<8x8xbf16>
    %68 = vector.shape_cast %64 : vector<8x8xbf16> to vector<1x8x8xbf16>
    tpu.vector_store %arg15[%c2, %65, %c0_25], %68 {strides = array<i32>} : memref<4x8x8xbf16, #tpu.memory_space<vmem>>, vector<1x8x8xbf16>,
    %69 = vector.extract_strided_slice %33 {offsets = [0, 48], sizes = [8, 8], strides = [1, 1]} : vector<8x96xbf16> to vector<8x8xbf16>
    %c2_26 = arith.constant 2 : index
    %70 = arith.index_cast %1 : i32 to index
    %c0_27 = arith.constant 0 : index
    %71 = vector.load %arg16[%c2_26, %70, %c0_27] : memref<4x8x8xbf16, #tpu.memory_space<vmem>>, vector<1x8x8xbf16>
    %72 = vector.shape_cast %71 : vector<1x8x8xbf16> to vector<8x8xbf16>
    %73 = vector.shape_cast %69 : vector<8x8xbf16> to vector<1x8x8xbf16>
    tpu.vector_store %arg16[%c2_26, %70, %c0_27], %73 {strides = array<i32>} : memref<4x8x8xbf16, #tpu.memory_space<vmem>>, vector<1x8x8xbf16>,
    %74 = vector.extract_strided_slice %33 {offsets = [0, 80], sizes = [8, 8], strides = [1, 1]} : vector<8x96xbf16> to vector<8x8xbf16>
    %c2_28 = arith.constant 2 : index
    %75 = arith.index_cast %1 : i32 to index
    %c0_29 = arith.constant 0 : index
    %76 = vector.load %arg17[%c2_28, %75, %c0_29] : memref<4x8x8xbf16, #tpu.memory_space<vmem>>, vector<1x8x8xbf16>
    %77 = vector.shape_cast %76 : vector<1x8x8xbf16> to vector<8x8xbf16>
    %78 = vector.shape_cast %74 : vector<8x8xbf16> to vector<1x8x8xbf16>
    tpu.vector_store %arg17[%c2_28, %75, %c0_29], %78 {strides = array<i32>} : memref<4x8x8xbf16, #tpu.memory_space<vmem>>, vector<1x8x8xbf16>,
    %79 = vector.extract_strided_slice %33 {offsets = [0, 24], sizes = [8, 8], strides = [1, 1]} : vector<8x96xbf16> to vector<8x8xbf16>
    %c3 = arith.constant 3 : index
    %80 = arith.index_cast %1 : i32 to index
    %c0_30 = arith.constant 0 : index
    %81 = vector.load %arg15[%c3, %80, %c0_30] : memref<4x8x8xbf16, #tpu.memory_space<vmem>>, vector<1x8x8xbf16>
    %82 = vector.shape_cast %81 : vector<1x8x8xbf16> to vector<8x8xbf16>
    %83 = vector.shape_cast %79 : vector<8x8xbf16> to vector<1x8x8xbf16>
    tpu.vector_store %arg15[%c3, %80, %c0_30], %83 {strides = array<i32>} : memref<4x8x8xbf16, #tpu.memory_space<vmem>>, vector<1x8x8xbf16>,
    %84 = vector.extract_strided_slice %33 {offsets = [0, 56], sizes = [8, 8], strides = [1, 1]} : vector<8x96xbf16> to vector<8x8xbf16>
    %c3_31 = arith.constant 3 : index
    %85 = arith.index_cast %1 : i32 to index
    %c0_32 = arith.constant 0 : index
    %86 = vector.load %arg16[%c3_31, %85, %c0_32] : memref<4x8x8xbf16, #tpu.memory_space<vmem>>, vector<1x8x8xbf16>
    %87 = vector.shape_cast %86 : vector<1x8x8xbf16> to vector<8x8xbf16>
    %88 = vector.shape_cast %84 : vector<8x8xbf16> to vector<1x8x8xbf16>
    tpu.vector_store %arg16[%c3_31, %85, %c0_32], %88 {strides = array<i32>} : memref<4x8x8xbf16, #tpu.memory_space<vmem>>, vector<1x8x8xbf16>,
    %89 = vector.extract_strided_slice %33 {offsets = [0, 88], sizes = [8, 8], strides = [1, 1]} : vector<8x96xbf16> to vector<8x8xbf16>
    %c3_33 = arith.constant 3 : index
    %90 = arith.index_cast %1 : i32 to index
    %c0_34 = arith.constant 0 : index
    %91 = vector.load %arg17[%c3_33, %90, %c0_34] : memref<4x8x8xbf16, #tpu.memory_space<vmem>>, vector<1x8x8xbf16>
    %92 = vector.shape_cast %91 : vector<1x8x8xbf16> to vector<8x8xbf16>
    %93 = vector.shape_cast %89 : vector<8x8xbf16> to vector<1x8x8xbf16>
    tpu.vector_store %arg17[%c3_33, %90, %c0_34], %93 {strides = array<i32>} : memref<4x8x8xbf16, #tpu.memory_space<vmem>>, vector<1x8x8xbf16>,
    %c1_i32 = arith.constant 1 : i32
    %c0_i32_35 = arith.constant 0 : i32
    %c8_i32_36 = arith.constant 8 : i32
    %94 = arith.muli %c0_i32_35, %c8_i32_36 : i32
    %95 = tpu.assume_multiple %94, 8 : i32
    %c0_37 = arith.constant 0 : index
    %96 = arith.index_cast %95 : i32 to index
    %c0_38 = arith.constant 0 : index
    %97 = vector.load %arg15[%c0_37, %96, %c0_38] : memref<4x8x8xbf16, #tpu.memory_space<vmem>>, vector<4x8x8xbf16>
    %c0_39 = arith.constant 0 : index
    %c0_40 = arith.constant 0 : index
    %c0_41 = arith.constant 0 : index
    %98 = vector.load %arg16[%c0_39, %c0_40, %c0_41] : memref<4x8x8xbf16, #tpu.memory_space<vmem>>, vector<4x8x8xbf16>
    "tpu.trace_start"() <{level = 10 : i32, message = "hqd,hkd->hqk"}> : () -> ()
    %cst_42 = arith.constant dense<0.000000e+00> : vector<4x8x8xf32>
    %99 = tpu.matmul %97, %98, %cst_42 {dimension_numbers = #tpu.dot_dimension_numbers<[2], [2], [1], [1], [0, 0, 0, 1, 1, 1], [0], [0]>} : vector<4x8x8xbf16>, vector<4x8x8xbf16>, vector<4x8x8xf32> -> vector<4x8x8xf32>
    "tpu.trace_stop"() : () -> ()
    %cst_43 = arith.constant dense<0xFF800000> : vector<4x8xf32>
    %100 = vector.multi_reduction <maximumf>, %99, %cst_43 [2] : vector<4x8x8xf32> to vector<4x8xf32>
    %101 = vector.shape_cast %100 : vector<4x8xf32> to vector<4x8x1xf32>
    %102 = vector.broadcast %101 : vector<4x8x1xf32> to vector<4x8x8xf32>
    %103 = arith.subf %99, %102 : vector<4x8x8xf32>
    %104 = math.exp %103 : vector<4x8x8xf32>
    %cst_44 = arith.constant dense<0.000000e+00> : vector<4x8xf32>
    %105 = vector.multi_reduction <add>, %104, %cst_44 [2] : vector<4x8x8xf32> to vector<4x8xf32>
    %106 = vector.shape_cast %105 : vector<4x8xf32> to vector<4x8x1xf32>
    %107 = tpu.reciprocal %106 {approx = true} : vector<4x8x1xf32> -> vector<4x8x1xf32>
    %108 = vector.broadcast %107 : vector<4x8x1xf32> to vector<4x8x8xf32>
    %109 = arith.mulf %104, %108 : vector<4x8x8xf32>
    %110 = arith.truncf %109 : vector<4x8x8xf32> to vector<4x8x8xbf16>
    %c0_45 = arith.constant 0 : index
    %c0_46 = arith.constant 0 : index
    %c0_47 = arith.constant 0 : index
    %111 = vector.load %arg17[%c0_45, %c0_46, %c0_47] : memref<4x8x8xbf16, #tpu.memory_space<vmem>>, vector<4x8x8xbf16>
    "tpu.trace_start"() <{level = 10 : i32, message = "hqk,hkd->hqd"}> : () -> ()
    %cst_48 = arith.constant dense<0.000000e+00> : vector<4x8x8xf32>
    %112 = tpu.matmul %110, %111, %cst_48 {dimension_numbers = #tpu.dot_dimension_numbers<[2], [1], [1], [2], [0, 0, 0, 1, 1, 2], [0], [0]>} : vector<4x8x8xbf16>, vector<4x8x8xbf16>, vector<4x8x8xf32> -> vector<4x8x8xf32>
    "tpu.trace_stop"() : () -> ()
    %113 = vector.extract_strided_slice %112 {offsets = [0, 0, 0], sizes = [1, 8, 8], strides = [1, 1, 1]} : vector<4x8x8xf32> to vector<1x8x8xf32>
    %114 = vector.shape_cast %113 : vector<1x8x8xf32> to vector<8x8xf32>
    %115 = arith.truncf %114 : vector<8x8xf32> to vector<8x8xbf16>
    %c0_49 = arith.constant 0 : index
    %c0_50 = arith.constant 0 : index
    %116 = vector.load %arg18[%c0_49, %c0_50] : memref<8x32xbf16, #tpu.memory_space<vmem>>, vector<8x8xbf16>
    tpu.vector_store %arg18[%c0_49, %c0_50], %115 {strides = array<i32>} : memref<8x32xbf16, #tpu.memory_space<vmem>>, vector<8x8xbf16>,
    %117 = vector.extract_strided_slice %112 {offsets = [1, 0, 0], sizes = [1, 8, 8], strides = [1, 1, 1]} : vector<4x8x8xf32> to vector<1x8x8xf32>
    %118 = vector.shape_cast %117 : vector<1x8x8xf32> to vector<8x8xf32>
    %119 = arith.truncf %118 : vector<8x8xf32> to vector<8x8xbf16>
    %c0_51 = arith.constant 0 : index
    %c8 = arith.constant 8 : index
    %120 = vector.load %arg18[%c0_51, %c8] : memref<8x32xbf16, #tpu.memory_space<vmem>>, vector<8x8xbf16>
    tpu.vector_store %arg18[%c0_51, %c8], %119 {strides = array<i32>} : memref<8x32xbf16, #tpu.memory_space<vmem>>, vector<8x8xbf16>,
    %121 = vector.extract_strided_slice %112 {offsets = [2, 0, 0], sizes = [1, 8, 8], strides = [1, 1, 1]} : vector<4x8x8xf32> to vector<1x8x8xf32>
    %122 = vector.shape_cast %121 : vector<1x8x8xf32> to vector<8x8xf32>
    %123 = arith.truncf %122 : vector<8x8xf32> to vector<8x8xbf16>
    %c0_52 = arith.constant 0 : index
    %c16 = arith.constant 16 : index
    %124 = vector.load %arg18[%c0_52, %c16] : memref<8x32xbf16, #tpu.memory_space<vmem>>, vector<8x8xbf16>
    tpu.vector_store %arg18[%c0_52, %c16], %123 {strides = array<i32>} : memref<8x32xbf16, #tpu.memory_space<vmem>>, vector<8x8xbf16>,
    %125 = vector.extract_strided_slice %112 {offsets = [3, 0, 0], sizes = [1, 8, 8], strides = [1, 1, 1]} : vector<4x8x8xf32> to vector<1x8x8xf32>
    %126 = vector.shape_cast %125 : vector<1x8x8xf32> to vector<8x8xf32>
    %127 = arith.truncf %126 : vector<8x8xf32> to vector<8x8xbf16>
    %c0_53 = arith.constant 0 : index
    %c24 = arith.constant 24 : index
    %128 = vector.load %arg18[%c0_53, %c24] : memref<8x32xbf16, #tpu.memory_space<vmem>>, vector<8x8xbf16>
    tpu.vector_store %arg18[%c0_53, %c24], %127 {strides = array<i32>} : memref<8x32xbf16, #tpu.memory_space<vmem>>, vector<8x8xbf16>,
    %c0_54 = arith.constant 0 : index
    %c0_55 = arith.constant 0 : index
    %129 = vector.load %arg18[%c0_54, %c0_55] : memref<8x32xbf16, #tpu.memory_space<vmem>>, vector<8x32xbf16>
    %c0_56 = arith.constant 0 : index
    %c0_57 = arith.constant 0 : index
    %130 = vector.load %arg6[%c0_56, %c0_57] : memref<32x32xbf16, #tpu.memory_space<vmem>>, vector<32x32xbf16>
    %cst_58 = arith.constant dense<0.000000e+00> : vector<8x32xf32>
    %131 = tpu.matmul %129, %130, %cst_58 {dimension_numbers = #tpu.dot_dimension_numbers<[1], [0], [0], [1], [0, 0, 1, 1], [], []>} : vector<8x32xbf16>, vector<32x32xbf16>, vector<8x32xf32> -> vector<8x32xf32>
    %c0_59 = arith.constant 0 : index
    %c0_60 = arith.constant 0 : index
    %132 = vector.load %arg7[%c0_59, %c0_60] : memref<1x32xf32, #tpu.memory_space<vmem>>, vector<1x32xf32>
    %133 = vector.broadcast %132 : vector<1x32xf32> to vector<8x32xf32>
    %134 = arith.addf %131, %133 : vector<8x32xf32>
    %c0_61 = arith.constant 0 : index
    %135 = arith.index_cast %95 : i32 to index
    %c0_62 = arith.constant 0 : index
    %136 = vector.load %arg1[%c0_61, %135, %c0_62] : memref<1x8x32xf32, #tpu.memory_space<vmem>>, vector<1x8x32xf32>
    %137 = vector.shape_cast %136 : vector<1x8x32xf32> to vector<8x32xf32>
    %138 = arith.addf %137, %134 : vector<8x32xf32>
    %c0_63 = arith.constant 0 : index
    %c0_64 = arith.constant 0 : index
    %139 = vector.load %arg8[%c0_63, %c0_64] : memref<1x32xf32, #tpu.memory_space<vmem>>, vector<1x32xf32>
    %c0_65 = arith.constant 0 : index
    %c0_66 = arith.constant 0 : index
    %140 = vector.load %arg9[%c0_65, %c0_66] : memref<1x32xf32, #tpu.memory_space<vmem>>, vector<1x32xf32>
    %cst_67 = arith.constant dense<0.000000e+00> : vector<8xf32>
    %141 = vector.multi_reduction <add>, %138, %cst_67 [1] : vector<8x32xf32> to vector<8xf32>
    %142 = vector.shape_cast %141 : vector<8xf32> to vector<8x1xf32>
    %cst_68 = arith.constant 3.200000e+01 : f32
    %143 = vector.broadcast %cst_68 : f32 to vector<8x1xf32>
    %144 = arith.divf %142, %143 : vector<8x1xf32>
    %145 = vector.broadcast %144 : vector<8x1xf32> to vector<8x32xf32>
    %146 = arith.subf %138, %145 : vector<8x32xf32>
    %147 = arith.mulf %146, %146 : vector<8x32xf32>
    %cst_69 = arith.constant dense<0.000000e+00> : vector<8xf32>
    %148 = vector.multi_reduction <add>, %147, %cst_69 [1] : vector<8x32xf32> to vector<8xf32>
    %149 = vector.shape_cast %148 : vector<8xf32> to vector<8x1xf32>
    %cst_70 = arith.constant 3.200000e+01 : f32
    %150 = vector.broadcast %cst_70 : f32 to vector<8x1xf32>
    %151 = arith.divf %149, %150 : vector<8x1xf32>
    %cst_71 = arith.constant 9.99999974E-6 : f32
    %152 = vector.broadcast %cst_71 : f32 to vector<8x1xf32>
    %153 = arith.addf %151, %152 : vector<8x1xf32>
    %154 = math.rsqrt %153 : vector<8x1xf32>
    %155 = vector.broadcast %154 : vector<8x1xf32> to vector<8x32xf32>
    %156 = arith.mulf %146, %155 : vector<8x32xf32>
    %157 = vector.broadcast %139 : vector<1x32xf32> to vector<8x32xf32>
    %158 = arith.mulf %156, %157 : vector<8x32xf32>
    %159 = vector.broadcast %140 : vector<1x32xf32> to vector<8x32xf32>
    %160 = arith.addf %158, %159 : vector<8x32xf32>
    %161 = arith.truncf %160 : vector<8x32xf32> to vector<8x32xbf16>
    %c0_72 = arith.constant 0 : index
    %c0_73 = arith.constant 0 : index
    %162 = vector.load %arg10[%c0_72, %c0_73] : memref<32x128xbf16, #tpu.memory_space<vmem>>, vector<32x128xbf16>
    %cst_74 = arith.constant dense<0.000000e+00> : vector<8x128xf32>
    %163 = tpu.matmul %161, %162, %cst_74 {dimension_numbers = #tpu.dot_dimension_numbers<[1], [0], [0], [1], [0, 0, 1, 1], [], []>} : vector<8x32xbf16>, vector<32x128xbf16>, vector<8x128xf32> -> vector<8x128xf32>
    %c0_75 = arith.constant 0 : index
    %c0_76 = arith.constant 0 : index
    %164 = vector.load %arg11[%c0_75, %c0_76] : memref<1x128xf32, #tpu.memory_space<vmem>>, vector<1x128xf32>
    %165 = vector.broadcast %164 : vector<1x128xf32> to vector<8x128xf32>
    %166 = arith.addf %163, %165 : vector<8x128xf32>
    %cst_77 = arith.constant 5.000000e-01 : f32
    %167 = vector.broadcast %cst_77 : f32 to vector<8x128xf32>
    %168 = arith.mulf %167, %166 : vector<8x128xf32>
    %cst_78 = arith.constant 0.707106769 : f32
    %169 = vector.broadcast %cst_78 : f32 to vector<8x128xf32>
    %170 = arith.mulf %166, %169 : vector<8x128xf32>
    %171 = math.erf %170 : vector<8x128xf32>
    %cst_79 = arith.constant 1.000000e+00 : f32
    %172 = vector.broadcast %cst_79 : f32 to vector<8x128xf32>
    %173 = arith.addf %172, %171 : vector<8x128xf32>
    %174 = arith.mulf %168, %173 : vector<8x128xf32>
    %175 = arith.truncf %174 : vector<8x128xf32> to vector<8x128xbf16>
    %c0_80 = arith.constant 0 : index
    %c0_81 = arith.constant 0 : index
    %176 = vector.load %arg12[%c0_80, %c0_81] : memref<128x32xbf16, #tpu.memory_space<vmem>>, vector<128x32xbf16>
    %cst_82 = arith.constant dense<0.000000e+00> : vector<8x32xf32>
    %177 = tpu.matmul %175, %176, %cst_82 {dimension_numbers = #tpu.dot_dimension_numbers<[1], [0], [0], [1], [0, 0, 1, 1], [], []>} : vector<8x128xbf16>, vector<128x32xbf16>, vector<8x32xf32> -> vector<8x32xf32>
    %c0_83 = arith.constant 0 : index
    %c0_84 = arith.constant 0 : index
    %178 = vector.load %arg13[%c0_83, %c0_84] : memref<1x32xf32, #tpu.memory_space<vmem>>, vector<1x32xf32>
    %179 = vector.broadcast %178 : vector<1x32xf32> to vector<8x32xf32>
    %180 = arith.addf %177, %179 : vector<8x32xf32>
    %181 = arith.addf %138, %180 : vector<8x32xf32>
    %c0_85 = arith.constant 0 : index
    %182 = arith.index_cast %95 : i32 to index
    %c0_86 = arith.constant 0 : index
    %183 = vector.load %arg14[%c0_85, %182, %c0_86] : memref<1x8x32xf32, #tpu.memory_space<vmem>>, vector<1x8x32xf32>
    %184 = vector.shape_cast %183 : vector<1x8x32xf32> to vector<8x32xf32>
    %185 = vector.shape_cast %181 : vector<8x32xf32> to vector<1x8x32xf32>
    tpu.vector_store %arg14[%c0_85, %182, %c0_86], %185 {strides = array<i32>} : memref<1x8x32xf32, #tpu.memory_space<vmem>>, vector<1x8x32xf32>,
    %c1_i32_87 = arith.constant 1 : i32
    return
  }
  func.func @transform_0(%arg0: i32) -> (i32, i32, i32) {
    %c0_i32 = arith.constant 0 : i32
    %c0_i32_0 = arith.constant 0 : i32
    %c0_i32_1 = arith.constant 0 : i32
    return %arg0, %c0_i32, %c0_i32_0 : i32, i32, i32
  }
  func.func @transform_1(%arg0: i32) -> (i32, i32) {
    %c0_i32 = arith.constant 0 : i32
    %c0_i32_0 = arith.constant 0 : i32
    %c0_i32_1 = arith.constant 0 : i32
    return %c0_i32, %c0_i32_0 : i32, i32
  }
  func.func @transform_2(%arg0: i32) -> (i32, i32) {
    %c0_i32 = arith.constant 0 : i32
    %c0_i32_0 = arith.constant 0 : i32
    %c0_i32_1 = arith.constant 0 : i32
    return %c0_i32, %c0_i32_0 : i32, i32
  }
  func.func @transform_3(%arg0: i32) -> (i32, i32) {
    %c0_i32 = arith.constant 0 : i32
    %c0_i32_0 = arith.constant 0 : i32
    %c0_i32_1 = arith.constant 0 : i32
    return %c0_i32, %c0_i32_0 : i32, i32
  }
  func.func @transform_4(%arg0: i32) -> (i32, i32) {
    %c0_i32 = arith.constant 0 : i32
    %c0_i32_0 = arith.constant 0 : i32
    %c0_i32_1 = arith.constant 0 : i32
    return %c0_i32, %c0_i32_0 : i32, i32
  }
  func.func @transform_5(%arg0: i32) -> (i32, i32) {
    %c0_i32 = arith.constant 0 : i32
    %c0_i32_0 = arith.constant 0 : i32
    %c0_i32_1 = arith.constant 0 : i32
    return %c0_i32, %c0_i32_0 : i32, i32
  }
  func.func @transform_6(%arg0: i32) -> (i32, i32) {
    %c0_i32 = arith.constant 0 : i32
    %c0_i32_0 = arith.constant 0 : i32
    %c0_i32_1 = arith.constant 0 : i32
    return %c0_i32, %c0_i32_0 : i32, i32
  }
  func.func @transform_7(%arg0: i32) -> (i32, i32) {
    %c0_i32 = arith.constant 0 : i32
    %c0_i32_0 = arith.constant 0 : i32
    %c0_i32_1 = arith.constant 0 : i32
    return %c0_i32, %c0_i32_0 : i32, i32
  }
  func.func @transform_8(%arg0: i32) -> (i32, i32) {
    %c0_i32 = arith.constant 0 : i32
    %c0_i32_0 = arith.constant 0 : i32
    %c0_i32_1 = arith.constant 0 : i32
    return %c0_i32, %c0_i32_0 : i32, i32
  }
  func.func @transform_9(%arg0: i32) -> (i32, i32) {
    %c0_i32 = arith.constant 0 : i32
    %c0_i32_0 = arith.constant 0 : i32
    %c0_i32_1 = arith.constant 0 : i32
    return %c0_i32, %c0_i32_0 : i32, i32
  }
  func.func @transform_10(%arg0: i32) -> (i32, i32) {
    %c0_i32 = arith.constant 0 : i32
    %c0_i32_0 = arith.constant 0 : i32
    %c0_i32_1 = arith.constant 0 : i32
    return %c0_i32, %c0_i32_0 : i32, i32
  }
  func.func @transform_11(%arg0: i32) -> (i32, i32) {
    %c0_i32 = arith.constant 0 : i32
    %c0_i32_0 = arith.constant 0 : i32
    %c0_i32_1 = arith.constant 0 : i32
    return %c0_i32, %c0_i32_0 : i32, i32
  }
  func.func @transform_12(%arg0: i32) -> (i32, i32) {
    %c0_i32 = arith.constant 0 : i32
    %c0_i32_0 = arith.constant 0 : i32
    %c0_i32_1 = arith.constant 0 : i32
    return %c0_i32, %c0_i32_0 : i32, i32
  }
  func.func @transform_13(%arg0: i32) -> (i32, i32, i32) {
    %c0_i32 = arith.constant 0 : i32
    %c0_i32_0 = arith.constant 0 : i32
    %c0_i32_1 = arith.constant 0 : i32
    return %arg0, %c0_i32, %c0_i32_0 : i32, i32, i32
  }
}

</mosaic_0001>

<bundles_post_ra>
// kernel: tpu_custom_call.1
= control target key start
LH: loop header
LB: loop body
LE: loop exit
PB: predicated region body
PF: predicated region fallthrough
CT: control target
= control target key end

     0   :  { %s2132_s0 = inlined_call_operand.vmem [shape: f32[2,8,32], index: 0, kind: input, shape index: {}]   ;;  %s2133_s1 = inlined_call_operand.vmem [shape: f32[1,32], index: 1, kind: input, shape index: {}]   ;;  %s2134_s2 = inlined_call_operand.vmem [shape: f32[1,32], index: 2, kind: input, shape index: {}]   ;;  %s2135_s3 = inlined_call_operand.vmem [shape: bf16[32,96], index: 3, kind: input, shape index: {}]   ;;  %s2136_s4 = inlined_call_operand.vmem [shape: f32[1,96], index: 4, kind: input, shape index: {}]   ;;  %s2137_s5 = inlined_call_operand.vmem [shape: bf16[32,32], index: 5, kind: input, shape index: {}]   ;;  %s2138_s6 = inlined_call_operand.vmem [shape: f32[1,32], index: 6, kind: input, shape index: {}]   ;;  %s2139_s7 = inlined_call_operand.vmem [shape: f32[1,32], index: 7, kind: input, shape index: {}]   ;;  %s2140_s8 = inlined_call_operand.vmem [shape: f32[1,32], index: 8, kind: input, shape index: {}]   ;;  %s2141_s9 = inlined_call_operand.vmem [shape: bf16[32,128], index: 9, kind: input, shape index: {}]   ;;  %s2142_s10 = inlined_call_operand.vmem [shape: f32[1,128], index: 10, kind: input, shape index: {}]   ;;  %s2143_s11 = inlined_call_operand.vmem [shape: bf16[128,32], index: 11, kind: input, shape index: {}]   ;;  %s2144_s12 = inlined_call_operand.vmem [shape: f32[1,32], index: 12, kind: input, shape index: {}]   ;;  %s2145_s13 = inlined_call_operand.hbm [shape: f32[2,8,32], index: 13, kind: output, shape index: {}]  }
   0x1   :  { %2146 = sst [smem:[#allocation9_spill]] %s2132_s0 }
   0x2   :  { %2147 = sst [smem:[#allocation10_spill]] %s2133_s1 }
   0x3   :  { %2148 = sst [smem:[#allocation11_spill]] %s2134_s2 }
   0x4   :  { %18 = vsyncpa [#allocation7], 0 }
   0x5   :  { %20 = vsyncpa [#allocation7 + $0x1], 0  ;;  %s1851_s25 = smov 0   ;;  %s1853_s26 = smov 0  }
   0x6   :  { %s1855_s27 = smov 0   ;;  %s1857_s28 = smov 0  }
   0x7 LB: > { %s1872_s29 = sadd.s32 4294967295, %s1762_s28   ;;  %s1432_s30 = sadd.s32 4294967294, %s1762_s28   ;;  %s1762_s28 = sphi %s1857_s28, %s2157_s28   ;;  %s1758_s27 = sphi %s1855_s27, %s2156_s27   ;;  %s1754_s26 = sphi %s1853_s26, %s2155_s26   ;;  %s1750_s25 = sphi %s1851_s25, %s2154_s25  }
   0x8   : > { %s1876_s14 = sadd.s32 1, %s1762_s28   ;;  %s311_s15 = sadd.s32 1, %s1758_s27 }
   0x9   : > { %s308_s16 = ssub.s32 %s1762_s28, %s1876_s14  ;;  %p321_p0 = scmp.ne.s32.totalorder %s1758_s27, %s1754_s26 }
   0xa   : > { %p309_p1 = scmp.eq.s32.totalorder %s308_s16, 0  ;;  %p322_p2 = scmp.eq.s32.totalorder %s1872_s29, 1 }
   0xb   : > { %p327_p3 = scmp.ne.s32.totalorder %s1754_s26, %s1750_s25  ;;  %p328_p4 = scmp.eq.s32.totalorder %s1432_s30, 1 }
   0xc   : > { %s1887_s17 = scalar_select %p309_p1, %s1758_s27, %s311_s15  }
   0xd   : > { %p1889_p5 = por %p322_p2, %p321_p0  ;;  %p1893_p6 = por %p328_p4, %p327_p3 }
   0xe   : > { %p1435_p7 = scmp.ge.s32.totalorder %s1762_s28, 1  ;;  %p389_p8 = scmp.lt.s32.totalorder %s1762_s28, 3 }
  0x10   : > { %p390_p9 = pnand %p1435_p7, %p389_p8 }
  0x11   : > { %p432_p10 = scmp.lt.s32.totalorder (!%p390_p9), %s1872_s29, 1  ;;  %vm440_vm0 = vcmask (!%p390_p9), 261120   ;;  %s2151_s0 = sld [smem:[#allocation9_spill]] (!%p390_p9)  ;;  %v1664_v7 = vld [vmem:[%s2135_s3] sm:$0xff] (!%p390_p9)   ;;  %v1764_v8 = vmov (!%p390_p9), 0.0   ;;  %vm1765_vm1 = vmmov (!%p390_p9), 0  }
  0x12   : > { %393 = sbr.rel (%p390_p9) target bundleno = 2576 (0xa10), region = 72  ;;  %1517 = vmatprep.subr.bf16.mxu0 (!%p390_p9), %v1764_v8  ;;  %1521 = vmatprep.mubr.msk.bf16.mxu0 (!%p390_p9), %vm1765_vm1, %v1764_v8  ;;  %v1665_v9 = vld [vmem:[%s2135_s3 + $0x8] sm:$0xff] (!%p390_p9)   ;;  %s2152_s1 = sld [smem:[#allocation10_spill]] (!%p390_p9)  ;;  %v1440_v20 = vld [vmem:[%s2136_s4] ss:$0 sm:$0xff] (!%p390_p9)  ;;  %vm537_vm2 = vcmask (!%p390_p9), 60416  }
  0x13   : > { %1518 = vmatpush3.bf16.msra.mxu0 (!%p390_p9), %v1664_v7  ;;  %1537 = vmatprep.subr.bf16.mxu1 (!%p390_p9), %v1764_v8  ;;  %s2153_s2 = sld [smem:[#allocation11_spill]] (!%p390_p9)  ;;  %s1766_s16 = smov (!%p390_p9), 80   ;;  %vm615_vm3 = vcmask (!%p390_p9), 64512   ;;  %vm855_vm4 = vcmask (!%p390_p9), 1043456   ;;  %vm1046_vm5 = vcmask (!%p390_p9), 126016   ;;  %vm1055_vm6 = vcmask (!%p390_p9), 191616  }
  0x14   : > { %1519 = vmatprep.subr.bf16.mxu0 (!%p390_p9), %v1764_v8  ;;  %1539 = vmatprep.mubr.msk.bf16.mxu1 (!%p390_p9), %vm1765_vm1, %v1764_v8  ;;  %s1769_s22 = smov (!%p390_p9), 120   ;;  %s1770_s23 = smov (!%p390_p9), 72   ;;  %vm1064_vm7 = vcmask (!%p390_p9), 257216  }
  0x15   : > { %s1772_s30 = smov (!%p390_p9), 104   ;;  %s1773_s15 = smov (!%p390_p9), 64  }
  0x17   : > { %1520 = vmatpush3.bf16.msra.mxu0 (!%p390_p9), %v1665_v9 }
  0x18   : > { %1525 = vmatprep.subr.bf16.mxu0 (!%p390_p9), %v1764_v8  ;;  %v1438_v14 = vld [vmem:[%s2152_s1] ss:$0 sm:$0xff] (!%p390_p9) }
  0x19   : > { %s433_s20 = scalar_select %p432_p10, %s1872_s29, 1  ;;  %v1439_v16 = vld [vmem:[%s2153_s2] ss:$0 sm:$0xff] }
  0x1b   : > { %s1437_s21 = sshll.u32 %s433_s20, 3  ;;  %s1767_s20 = smov 96  }
  0x1c   : > { %s435_s24 = scalar_lea.vmem %s2151_s0, %s1437_s21  ;;  %s1768_s21 = smov 88  }
  0x1d   : > { %v1904_v0 = vld [vmem:[%s435_s24] sm:$0xff]  ;;  %s1771_s24 = smov 112  }
  0x1e   : > { %v441_v1 = vsel %vm440_vm0, %v1904_v0, 0.0 }
  0x1f   : > { %442 = vadd.xlane.f32.xlu0 %v441_v1 }
  0xac   : > { %v443_v2 = vpop.xlane.xlu0 %442 }
  0xad   : > { %v445_v3 = vmul.f32 0.03125, %v443_v2 }
  0xaf   : > { %v446_v4 = vsub.f32 %v1904_v0, %v445_v3 }
  0xb1   : > { %v447_v5 = vmul.f32 %v446_v4, %v446_v4 }
  0xb3   : > { %v448_v6 = vsel %vm440_vm0, %v447_v5, 0.0 }
  0xb4   : > { %449 = vadd.xlane.f32.xlu0 %v448_v6 }
 0x141   : > { %v450_v10 = vpop.xlane.xlu0 %449 }
 0x142   : > { %v451_v11 = vmul.f32 0.03125, %v450_v10 }
 0x144   : > { %v452_v12 = vadd.f32 1e-05, %v451_v11 }
 0x146   : > { %1678 = vrsqrt.f32 %v452_v12 }
 0x150   : > { %v1679_v13 = vpop.eup %1678 }
 0x151   : > { %v454_v15 = vmul.f32 %v1679_v13, %v446_v4 }
 0x153   : > { %v461_v17 = vmul.f32 %v1438_v14, %v454_v15 }
 0x155   : > { %v468_v18 = vadd.f32 %v1439_v16, %v461_v17 }
 0x157   : > { %v469_v19 = vpack.c.bf16 %v468_v18, %v468_v18 }
 0x159   : > { %1522 = vmatmul.mubr.msk.bf16.vlgmr.msra.gmra.mrb[0].mxu0 %vm440_vm0, %v469_v19 }
 0x15a   : > { %1527 = vmatprep.mubr.msk.bf16.mxu0 %vm1765_vm1, %v1764_v8 }
 0x22c   : > { %v530_v21 = vpop.f32.mrb[0].mxu0 }
 0x22d   : > { %v531_v22 = vadd.f32 %v1440_v20, %v530_v21  ;;  %v1523_v23 = vpop.f32.mrb[1].mxu0 }
 0x22e   : > { %v533_v24 = vpop.f32.mrb[2].mxu0 }
 0x22f   : > { %v1936_v25 = vpack.c.bf16 %v531_v22, %v531_v22  ;;  %v1524_v26 = vpop.f32.mrb[3].mxu0 }
 0x231   : > { %576 = vrot.lane.b32.xlu0 %v1936_v25, %s1766_s16  ;;  %542 = vrot.lane.b32.xlu1 %v1936_v25, %s1767_s20  ;;  %538 = vst.msk [vmem:[#allocation2] sm:$0xf] %vm537_vm2, %v1936_v25  ;;  %s1774_s16 = smov 48   ;;  %s1775_s20 = smov 40  }
 0x235   : > { %557 = vrot.lane.b32.xlu1 %v1936_v25, %s1768_s21  ;;  %s1776_s21 = smov 56  }
 0x238   : > { %v607_v38 = vld [vmem:[#allocation2] sm:$0xf] }
 0x239   : > { %550 = vrot.lane.b32.xlu1 %v1936_v25, %s1769_s22  ;;  %s1777_s22 = smov 16  }
 0x23d   : > { %595 = vrot.lane.b32.xlu1 %v1936_v25, %s1770_s23 }
 0x241   : > { %569 = vrot.lane.b32.xlu1 %v1936_v25, %s1771_s24 }
 0x245   : > { %588 = vrot.lane.b32.xlu1 %v1936_v25, %s1772_s30  ;;  %s429_s30 = sand.u32 1, %s1754_s26  }
 0x2a3   : > { %v577_v27 = vpop.permute.xlu0 %576  ;;  %v543_v28 = vpop.permute.xlu1 %542 }
 0x2a4   : > { %581 = vst.msk [vmem:[#allocation3 + $0x8] sm:$0xf] %vm537_vm2, %v577_v27  ;;  %545 = vst.msk [vmem:[#allocation3] sm:$0xf] %vm537_vm2, %v543_v28 }
 0x2a7   : > { %v558_v29 = vpop.permute.xlu1 %557 }
 0x2a8   : > { %562 = vst.msk [vmem:[#allocation3 + $0x4] sm:$0xf] %vm537_vm2, %v558_v29 }
 0x2ab   : > { %v551_v30 = vpop.permute.xlu1 %550  ;;  %v611_v31 = vld [vmem:[#allocation3] sm:$0xf]  ;;  %v613_v32 = vld [vmem:[#allocation3 + $0x8] sm:$0xf] }
 0x2ac   : > { %556 = vst.msk [vmem:[#allocation2 + $0x4] sm:$0xf] %vm537_vm2, %v551_v30  ;;  %v620_v33 = vsel %vm615_vm3, %v611_v31, 0  ;;  %v712_v34 = vsel %vm615_vm3, %v613_v32, 0 }
 0x2ad   : > { %1526 = vmatpush3.bf16.xpose.msra.mxu0 %v620_v33  ;;  %1538 = vmatpush3.bf16.xpose.msra.mxu1 %v712_v34 }
 0x2ae   : > { %1531 = vmatprep.subr.bf16.mxu0 %v1764_v8  ;;  %1549 = vmatprep.subr.bf16.mxu1 %v1764_v8 }
 0x2af   : > { %v596_v35 = vpop.permute.xlu1 %595  ;;  %v612_v36 = vld [vmem:[#allocation3 + $0x4] sm:$0xf] }
 0x2b0   : > { %600 = vst.msk [vmem:[#allocation3 + $0xc] sm:$0xf] %vm537_vm2, %v596_v35  ;;  %v666_v39 = vsel %vm615_vm3, %v612_v36, 0 }
 0x2b3   : > { %v570_v37 = vpop.permute.xlu1 %569  ;;  %v608_v42 = vld [vmem:[#allocation2 + $0x4] sm:$0xf] }
 0x2b4   : > { %575 = vst.msk [vmem:[#allocation2 + $0x8] sm:$0xf] %vm537_vm2, %v570_v37  ;;  %1528 = vmatmul.mubr.msk.bf16.vlgmr.msra.gmra.mrb[4].mxu0 %vm615_vm3, %v607_v38 }
 0x2b5   : > { %1532 = vmatpush3.bf16.xpose.msra.mxu0 %v666_v39  ;;  %1533 = vmatprep.mubr.msk.bf16.mxu0 %vm1765_vm1, %v1764_v8 }
 0x2b6   : > { %1543 = vmatprep.subr.bf16.mxu0 %v1764_v8 }
 0x2b7   : > { %v589_v40 = vpop.permute.xlu1 %588  ;;  %v614_v41 = vld [vmem:[#allocation3 + $0xc] sm:$0xf] }
 0x2b8   : > { %594 = vst.msk [vmem:[#allocation2 + $0xc] sm:$0xf] %vm537_vm2, %v589_v40  ;;  %v758_v44 = vsel %vm615_vm3, %v614_v41, 0 }
 0x2bb   : > { %v609_v43 = vld [vmem:[#allocation2 + $0x8] sm:$0xf] }
 0x2bc   : > { %1534 = vmatmul.mubr.msk.bf16.vlgmr.msra.gmra.mrb[8].mxu0 %vm615_vm3, %v608_v42  ;;  %1540 = vmatmul.mubr.msk.bf16.vlgmr.msra.gmra.mrb[0].mxu1 %vm615_vm3, %v609_v43 }
 0x2bd   : > { %1544 = vmatpush3.bf16.xpose.msra.mxu0 %v758_v44  ;;  %1545 = vmatprep.mubr.msk.bf16.mxu0 %vm1765_vm1, %v1764_v8 }
 0x2be   : > { %1551 = vmatprep.mubr.msk.bf16.mxu1 %vm1765_vm1, %v1764_v8  ;;  %1555 = vmatprep.subr.bf16.mxu0 %v1764_v8 }
 0x2bf   : > { %v610_v45 = vld [vmem:[#allocation2 + $0xc] sm:$0xf] }
 0x2c4   : > { %1546 = vmatmul.mubr.msk.bf16.vlgmr.msra.gmra.mrb[12].mxu0 %vm615_vm3, %v610_v45 }
 0x2c5   : > { %1557 = vmatprep.mubr.msk.bf16.mxu0 %vm1765_vm1, %v1764_v8 }
 0x387   : > { %v656_v46 = vpop.f32.mrb[4].mxu0 }
 0x388   : > { %v1529_v47 = vpop.f32.mrb[5].mxu0  ;;  %v800_v48 = vsel %vm615_vm3, %v656_v46, -inf }
 0x389   : > { %801 = vmax.xlane.f32.xlu1 %v800_v48  ;;  %v659_v49 = vpop.f32.mrb[6].mxu0 }
 0x38a   : > { %v1530_v50 = vpop.f32.mrb[7].mxu0 }
 0x38f   : > { %v702_v51 = vpop.f32.mrb[8].mxu0  ;;  %v748_v52 = vpop.f32.mrb[0].mxu1 }
 0x390   : > { %v1535_v53 = vpop.f32.mrb[9].mxu0  ;;  %v1541_v54 = vpop.f32.mrb[1].mxu1  ;;  %v806_v55 = vsel %vm615_vm3, %v748_v52, -inf  ;;  %v803_v56 = vsel %vm615_vm3, %v702_v51, -inf }
 0x391   : > { %v751_v57 = vpop.f32.mrb[2].mxu1  ;;  %807 = vmax.xlane.f32.xlu1 %v806_v55  ;;  %804 = vmax.xlane.f32.xlu0 %v803_v56  ;;  %v705_v58 = vpop.f32.mrb[10].mxu0 }
 0x392   : > { %v1536_v59 = vpop.f32.mrb[11].mxu0  ;;  %v1542_v60 = vpop.f32.mrb[3].mxu1 }
 0x397   : > { %v794_v61 = vpop.f32.mrb[12].mxu0 }
 0x398   : > { %v1547_v62 = vpop.f32.mrb[13].mxu0  ;;  %v809_v63 = vsel %vm615_vm3, %v794_v61, -inf }
 0x399   : > { %810 = vmax.xlane.f32.xlu0 %v809_v63  ;;  %v797_v1 = vpop.f32.mrb[14].mxu0  ;;  %v1666_v62 = vld [vmem:[%s2137_s5] sm:$0xff]  }
 0x39a   : > { %v1548_v2 = vpop.f32.mrb[15].mxu0  ;;  %v1667_v1 = vld [vmem:[%s2137_s5 + $0x8] sm:$0xff]  }
 0x3a2   : > { %546 = vrot.lane.b32.xlu1 %v1936_v25, %s1773_s15  ;;  %s1436_s15 = sshll.u32 %s429_s30, 3 }
 0x416   : > { %v802_v3 = vpop.xlane.xlu1 %801 }
 0x417   : > { %v812_v4 = vsub.f32 %v656_v46, %v802_v3 }
 0x419   : > { %v816_v5 = vmul.f32 1.442695, %v812_v4 }
 0x41b   : > { %1680 = vpow2.f32 %v816_v5 }
 0x41e   : > { %v808_v6 = vpop.xlane.xlu1 %807  ;;  %v805_v7 = vpop.xlane.xlu0 %804 }
 0x41f   : > { %v814_v9 = vsub.f32 %v748_v52, %v808_v6  ;;  %v813_v10 = vsub.f32 %v702_v51, %v805_v7 }
 0x421   : > { %v820_v11 = vmul.f32 1.442695, %v814_v9  ;;  %v818_v12 = vmul.f32 1.442695, %v813_v10 }
 0x422   : > { %v547_v13 = vpop.permute.xlu1 %546 }
 0x423   : > { %1682 = vpow2.f32 %v820_v11  ;;  %549 = vst.msk [vmem:[#allocation4] sm:$0xf] %vm537_vm2, %v547_v13 }
 0x424   : > { %1684 = vpow2.f32 %v818_v12 }
 0x425   : > { %v1681_v14 = vpop.eup %1680 }
 0x426   : > { %v811_v15 = vpop.xlane.xlu0 %810  ;;  %v824_v16 = vsel %vm615_vm3, %v1681_v14, 0.0 }
 0x427   : > { %v815_v17 = vsub.f32 %v794_v61, %v811_v15  ;;  %825 = vadd.xlane.f32.xlu1 %v824_v16  ;;  %v1456_v16 = vld [vmem:[%s2138_s6] ss:$0 sm:$0xff] }
 0x429   : > { %v822_v18 = vmul.f32 1.442695, %v815_v17 }
 0x42a   : > { %v848_v19 = vld [vmem:[#allocation4] sm:$0xf] }
 0x42b   : > { %1686 = vpow2.f32 %v822_v18  ;;  %v857_v20 = vsel %vm855_vm4, %v848_v19, 0 }
 0x42c   : > { %1550 = vmatpush3.bf16.msra.mxu1 %v857_v20 }
 0x42d   : > { %v1683_v21 = vpop.eup %1682  ;;  %1561 = vmatprep.subr.bf16.mxu1 %v1764_v8 }
 0x42e   : > { %v1685_v22 = vpop.eup %1684  ;;  %v830_v23 = vsel %vm615_vm3, %v1683_v21, 0.0 }
 0x42f   : > { %831 = vadd.xlane.f32.xlu1 %v830_v23  ;;  %v827_v24 = vsel %vm615_vm3, %v1685_v22, 0.0 }
 0x430   : > { %828 = vadd.xlane.f32.xlu0 %v827_v24 }
 0x435   : > { %v1687_v26 = vpop.eup %1686 }
 0x436   : > { %v833_v27 = vsel %vm615_vm3, %v1687_v26, 0.0 }
 0x437   : > { %834 = vadd.xlane.f32.xlu0 %v833_v27 }
 0x440   : > { %582 = vrot.lane.b32.xlu1 %v1936_v25, %s1774_s16  ;;  %s1778_s16 = smov 8  }
 0x444   : > { %601 = vrot.lane.b32.xlu1 %v1936_v25, %s1775_s20  ;;  %s1779_s20 = smov 24  }
 0x44d   : > { %563 = vrot.lane.b32.xlu0 %v1936_v25, %s1776_s21  ;;  %s1476_s21 = sshll.u32 %s1872_s29, 7  ;;  %s1351_s29 = scalar_lea.sflag [#allocation7], %s429_s30 }
 0x44e   : > { %s2089_s1 = scalar_lea.hbm %s2145_s13, %s1476_s21 }
 0x4b4   : > { %v826_v28 = vpop.xlane.xlu1 %825 }
 0x4b5   : > { %1688 = vrcp.f32 %v826_v28 }
 0x4bc   : > { %v832_v29 = vpop.xlane.xlu1 %831 }
 0x4bd   : > { %1690 = vrcp.f32 %v832_v29  ;;  %v829_v31 = vpop.xlane.xlu0 %828 }
 0x4be   : > { %1692 = vrcp.f32 %v829_v31  ;;  %v1670_v31 = vld [vmem:[%s2143_s11] sm:$0xff]  }
 0x4bf   : > { %v1689_v30 = vpop.eup %1688 }
 0x4c0   : > { %v840_v32 = vmul.f32 %v1689_v30, %v1681_v14  ;;  %v583_v33 = vpop.permute.xlu1 %582  ;;  %v1668_v30 = vld [vmem:[%s2141_s9] sm:$0xff]  }
 0x4c1   : > { %587 = vst.msk [vmem:[#allocation4 + $0x8] sm:$0xf] %vm537_vm2, %v583_v33  ;;  %v1672_v33 = vld [vmem:[%s2143_s11 + $0x10] sm:$0xff]  }
 0x4c2   : > { %v844_v34 = vpack.c.bf16 %v840_v32, %v840_v32  ;;  %v1671_v32 = vld [vmem:[%s2143_s11 + $0x8] sm:$0xff]  }
 0x4c4   : > { %1552 = vmatmul.mubr.msk.bf16.vlgmr.msra.gmra.mrb[4].mxu1 %vm615_vm3, %v844_v34  ;;  %v602_v35 = vpop.permute.xlu1 %601  ;;  %v835_v36 = vpop.xlane.xlu0 %834 }
 0x4c5   : > { %606 = vst.msk [vmem:[#allocation4 + $0xc] sm:$0xf] %vm537_vm2, %v602_v35  ;;  %1563 = vmatprep.mubr.msk.bf16.mxu1 %vm1765_vm1, %v1764_v8  ;;  %1694 = vrcp.f32 %v835_v36 }
 0x4c7   : > { %v1691_v25 = vpop.eup %1690 }
 0x4c8   : > { %v842_v37 = vmul.f32 %v1691_v25, %v1683_v21  ;;  %v564_v38 = vpop.permute.xlu0 %563  ;;  %v850_v39 = vld [vmem:[#allocation4 + $0x8] sm:$0xf]  ;;  %v1693_v42 = vpop.eup %1692 }
 0x4c9   : > { %568 = vst.msk [vmem:[#allocation4 + $0x4] sm:$0xf] %vm537_vm2, %v564_v38  ;;  %v949_v40 = vsel %vm855_vm4, %v850_v39, 0  ;;  %v841_v43 = vmul.f32 %v1693_v42, %v1685_v22  ;;  %v1461_v39 = vld [vmem:[%s2140_s8] ss:$0 sm:$0xff] }
 0x4ca   : > { %1562 = vmatpush3.bf16.msra.mxu1 %v949_v40  ;;  %v846_v41 = vpack.c.bf16 %v842_v37, %v842_v37  ;;  %v1460_v37 = vld [vmem:[%s2139_s7] ss:$0 sm:$0xff] }
 0x4cb   : > { %1573 = vmatprep.subr.bf16.mxu1 %v1764_v8  ;;  %v845_v47 = vpack.c.bf16 %v841_v43, %v841_v43  ;;  %v1673_v43 = vld [vmem:[%s2143_s11 + $0x18] sm:$0xff]  }
 0x4cc   : > { %v851_v46 = vld [vmem:[#allocation4 + $0xc] sm:$0xf] }
 0x4cd   : > { %1564 = vmatmul.mubr.msk.bf16.vlgmr.msra.gmra.mrb[8].mxu1 %vm615_vm3, %v846_v41  ;;  %v995_v49 = vsel %vm855_vm4, %v851_v46, 0  ;;  %v1676_v46 = vld [vmem:[%s2143_s11 + $0x30] sm:$0xff]  }
 0x4ce   : > { %1577 = vmatprep.mubr.msk.bf16.mxu1 %vm1765_vm1, %v1764_v8  ;;  %1574 = vmatpush3.bf16.msra.mxu1 %v1666_v62 }
 0x4cf   : > { %v1695_v48 = vpop.eup %1694  ;;  %1575 = vmatprep.subr.bf16.mxu1 %v1764_v8 }
 0x4d0   : > { %v849_v44 = vld [vmem:[#allocation4 + $0x4] sm:$0xf]  ;;  %v843_v50 = vmul.f32 %v1695_v48, %v1687_v26  ;;  %v1462_v48 = vld [vmem:[%s2142_s10] ss:$0 sm:$0xff] }
 0x4d1   : > { %v903_v45 = vsel %vm855_vm4, %v849_v44, 0  ;;  %v1674_v44 = vld [vmem:[%s2143_s11 + $0x20] sm:$0xff]  }
 0x4d2   : > { %1556 = vmatpush3.bf16.msra.mxu0 %v903_v45  ;;  %v847_v51 = vpack.c.bf16 %v843_v50, %v843_v50  ;;  %1576 = vmatpush3.bf16.msra.mxu1 %v1667_v1  ;;  %v1675_v45 = vld [vmem:[%s2143_s11 + $0x28] sm:$0xff]  }
 0x4d3   : > { %1567 = vmatprep.subr.bf16.mxu0 %v1764_v8  ;;  %1589 = vmatprep.subr.bf16.mxu1 %v1764_v8 }
 0x4d5   : > { %1558 = vmatmul.mubr.msk.bf16.vlgmr.msra.gmra.mrb[16].mxu0 %vm615_vm3, %v845_v47  ;;  %v1677_v47 = vld [vmem:[%s2143_s11 + $0x38] sm:$0xff]  }
 0x4d6   : > { %1568 = vmatpush3.bf16.msra.mxu0 %v995_v49  ;;  %1569 = vmatprep.mubr.msk.bf16.mxu0 %vm1765_vm1, %v1764_v8 }
 0x4d7   : > { %1581 = vmatprep.subr.bf16.mxu0 %v1764_v8 }
 0x4dd   : > { %1570 = vmatmul.mubr.msk.bf16.vlgmr.msra.gmra.mrb[20].mxu0 %vm615_vm3, %v847_v51 }
 0x4de   : > { %1585 = vmatprep.mubr.msk.bf16.mxu0 %vm1765_vm1, %v1764_v8  ;;  %1582 = vmatpush3.bf16.msra.mxu0 %v1668_v30 }
 0x4df   : > { %1583 = vmatprep.subr.bf16.mxu0 %v1764_v8 }
 0x597   : > { %v893_v52 = vpop.f32.mrb[4].mxu1 }
 0x598   : > { %v1037_v53 = vpack.c.bf16 %v893_v52, %v893_v52  ;;  %v1553_v54 = vpop.f32.mrb[5].mxu1 }
 0x599   : > { %v896_v55 = vpop.f32.mrb[6].mxu1 }
 0x59a   : > { %1038 = vst.msk [vmem:[#allocation5] sm:$0xf] %vm537_vm2, %v1037_v53  ;;  %v1554_v56 = vpop.f32.mrb[7].mxu1 }
 0x5a0   : > { %v985_v57 = vpop.f32.mrb[8].mxu1 }
 0x5a1   : > { %v1481_v58 = vpack.c.bf16 %v985_v57, %v985_v57  ;;  %v1565_v59 = vpop.f32.mrb[9].mxu1 }
 0x5a2   : > { %v988_v60 = vpop.f32.mrb[10].mxu1  ;;  %v1466_v59 = vld [vmem:[%s2144_s12] ss:$0 sm:$0xff] }
 0x5a3   : > { %1052 = vrot.lane.b32.xlu1 %v1481_v58, %s1777_s22  ;;  %v1566_v61 = vpop.f32.mrb[11].mxu1  ;;  %s431_s22 = scalar_lea.vmem [#allocation6], %s1436_s15 }
 0x5a4   : > { %s1364_s23 = sshll.u32 %s431_s22, 4  ;;  %s2091_s23 = int_to_ptr.vmem [resolvable:$true] %s1364_s23 }
 0x5a5   : > { %s1700_s15 = scalar_lea.vmem %s2091_s23, 128 }
 0x5a6   : > { %p1701_p11 = scmp.ne.s32.totalorder %s2091_s23, %s1700_s15 }
 0x5a8   : > { %v939_v63 = vpop.f32.mrb[16].mxu0  ;;  %p1702_p12 = pnand %p1701_p11, %p1889_p5 }
 0x5a9   : > { %v1480_v2 = vpack.c.bf16 %v939_v63, %v939_v63  ;;  %v1559_v3 = vpop.f32.mrb[17].mxu0 }
 0x5aa   : > { %v942_v4 = vpop.f32.mrb[18].mxu0  ;;  %p1703_p13 = pneg %p1702_p12 }
 0x5ab   : > { %1043 = vrot.lane.b32.xlu0 %v1480_v2, %s1778_s16  ;;  %v1560_v5 = vpop.f32.mrb[19].mxu0  ;;  %s1780_s16 = smov [#allocation6]  }
 0x5b0   : > { %v1031_v6 = vpop.f32.mrb[20].mxu0 }
 0x5b1   : > { %v1482_v7 = vpack.c.bf16 %v1031_v6, %v1031_v6  ;;  %v1571_v9 = vpop.f32.mrb[21].mxu0 }
 0x5b2   : > { %v1034_v10 = vpop.f32.mrb[22].mxu0 }
 0x5b3   : > { %1061 = vrot.lane.b32.xlu0 %v1482_v7, %s1779_s20  ;;  %v1572_v11 = vpop.f32.mrb[23].mxu0  ;;  %s1704_s20 = sshll.u32 %s1780_s16, 4  ;;  %s1705_s20 = int_to_ptr.vmem [resolvable:$false] %s1704_s20 }
 0x5b4   : > { %s1706_s2 = scalar_lea.vmem %s1705_s20, 256  ;;  %p1707_p0 = scmp.lt.s32.totalorder %s2091_s23, %s1705_s20 }
 0x5b5   : > { %p1708_p1 = scmp.lt.s32.totalorder %s1706_s2, %s1700_s15 }
 0x5b7   : > { %p1709_p2 = por %p1708_p1, %p1707_p0 }
 0x5b9   : > { %p1710_p3 = pnand %p1709_p2, %p1703_p13 }
 0x615   : > { %v1053_v13 = vpop.permute.xlu1 %1052 }
 0x61d   : > { %v1044_v12 = vpop.permute.xlu0 %1043 }
 0x61e   : > { %1047 = vst.msk [vmem:[#allocation5] sm:$0xf] %vm1046_vm5, %v1044_v12 }
 0x61f   : > { %1056 = vst.msk [vmem:[#allocation5] sm:$0xf] %vm1055_vm6, %v1053_v13 }
 0x625   : > { %v1062_v14 = vpop.permute.xlu0 %1061 }
 0x626   : > { %1065 = vst.msk [vmem:[#allocation5] sm:$0xf] %vm1064_vm7, %v1062_v14 }
 0x62d   : > { %v1066_v15 = vld [vmem:[#allocation5] sm:$0xf] }
 0x62e   : > { %1578 = vmatmul.mubr.msk.bf16.vlgmr.msra.gmra.mrb[12].mxu1 %vm440_vm0, %v1066_v15 }
 0x62f   : > { %1605 = vmatprep.mubr.msk.bf16.mxu1 %vm1765_vm1, %v1764_v8  ;;  %1590 = vmatpush3.bf16.msra.mxu1 %v1670_v31 }
 0x630   : > { %1591 = vmatprep.subr.bf16.mxu1 %v1764_v8 }
 0x633   : > { %1592 = vmatpush3.bf16.msra.mxu1 %v1671_v32 }
 0x634   : > { %1593 = vmatprep.subr.bf16.mxu1 %v1764_v8 }
 0x637   : > { %1594 = vmatpush3.bf16.msra.mxu1 %v1672_v33 }
 0x638   : > { %1595 = vmatprep.subr.bf16.mxu1 %v1764_v8 }
 0x63b   : > { %1596 = vmatpush3.bf16.msra.mxu1 %v1673_v43 }
 0x63c   : > { %1597 = vmatprep.subr.bf16.mxu1 %v1764_v8 }
 0x63f   : > { %1598 = vmatpush3.bf16.msra.mxu1 %v1674_v44 }
 0x640   : > { %1599 = vmatprep.subr.bf16.mxu1 %v1764_v8 }
 0x643   : > { %1600 = vmatpush3.bf16.msra.mxu1 %v1675_v45 }
 0x644   : > { %1601 = vmatprep.subr.bf16.mxu1 %v1764_v8 }
 0x647   : > { %1602 = vmatpush3.bf16.msra.mxu1 %v1676_v46 }
 0x648   : > { %1603 = vmatprep.subr.bf16.mxu1 %v1764_v8 }
 0x64b   : > { %1604 = vmatpush3.bf16.msra.mxu1 %v1677_v47 }
 0x701   : > { %v1127_v17 = vpop.f32.mrb[12].mxu1 }
 0x702   : > { %v1128_v18 = vadd.f32 %v1456_v16, %v1127_v17  ;;  %v1579_v19 = vpop.f32.mrb[13].mxu1 }
 0x703   : > { %v1130_v20 = vpop.f32.mrb[14].mxu1 }
 0x704   : > { %v2026_v21 = vadd.f32 %v1128_v18, %v1904_v0  ;;  %v1580_v22 = vpop.f32.mrb[15].mxu1  ;;  %v1669_v0 = vld [vmem:[%s2141_s9 + $0x8] sm:$0xff]  }
 0x705   : > { %1584 = vmatpush3.bf16.msra.mxu0 %v1669_v0 }
 0x706   : > { %v1137_v23 = vsel %vm440_vm0, %v2026_v21, 0.0 }
 0x707   : > { %1138 = vadd.xlane.f32.xlu1 %v1137_v23 }
 0x794   : > { %v1139_v24 = vpop.xlane.xlu1 %1138 }
 0x795   : > { %v1140_v26 = vmul.f32 0.03125, %v1139_v24 }
 0x797   : > { %v1141_v27 = vsub.f32 %v2026_v21, %v1140_v26 }
 0x799   : > { %v1142_v28 = vmul.f32 %v1141_v27, %v1141_v27 }
 0x79b   : > { %v1143_v29 = vsel %vm440_vm0, %v1142_v28, 0.0 }
 0x79c   : > { %1144 = vadd.xlane.f32.xlu0 %v1143_v29 }
 0x829   : > { %v1145_v34 = vpop.xlane.xlu0 %1144 }
 0x82a   : > { %v1146_v35 = vmul.f32 0.03125, %v1145_v34 }
 0x82c   : > { %v1147_v36 = vadd.f32 1e-05, %v1146_v35 }
 0x82e   : > { %1696 = vrsqrt.f32 %v1147_v36 }
 0x838   : > { %v1697_v25 = vpop.eup %1696 }
 0x839   : > { %v1149_v38 = vmul.f32 %v1697_v25, %v1141_v27 }
 0x83b   : > { %v1156_v40 = vmul.f32 %v1460_v37, %v1149_v38 }
 0x83d   : > { %v1163_v41 = vadd.f32 %v1461_v39, %v1156_v40 }
 0x83f   : > { %v1164_v42 = vpack.c.bf16 %v1163_v41, %v1163_v41 }
 0x841   : > { %1586 = vmatmul.mubr.msk.bf16.vlgmr.msra.gmra.mrb[24].mxu0 %vm440_vm0, %v1164_v42 }
 0x914   : > { %v1225_v49 = vpop.f32.mrb[24].mxu0 }
 0x915   : > { %v1226_v50 = vadd.f32 %v1462_v48, %v1225_v49  ;;  %v1587_v51 = vpop.f32.mrb[25].mxu0 }
 0x916   : > { %v1228_v52 = vpop.f32.mrb[26].mxu0 }
 0x917   : > { %v1232_v53 = vmul.f32 0.70710677, %v1226_v50  ;;  %v1588_v54 = vpop.f32.mrb[27].mxu0  ;;  %v1231_v8 = vmul.f32 0.5, %v1226_v50 }
 0x919   : > { %1698 = verf.f32 %v1232_v53 }
 0x923   : > { %v1699_v55 = vpop.eup %1698 }
 0x924   : > { %v1234_v56 = vadd.f32 1.0, %v1699_v55 }
 0x926   : > { %v1235_v57 = vmul.f32 %v1234_v56, %v1231_v8 }
 0x928   : > { %v1236_v58 = vpack.c.bf16 %v1235_v57, %v1235_v57 }
 0x92a   : > { %1606 = vmatmul.mubr.bf16.vlgmr.msra.gmra.mrb[16].mxu1 %v1236_v58 }
 0x9fd   : > { %v1342_v60 = vpop.f32.mrb[16].mxu1 }
 0x9fe   : > { %v1343_v61 = vadd.f32 %v1466_v59, %v1342_v60  ;;  %v1607_v62 = vpop.f32.mrb[17].mxu1 }
 0x9ff   : > { %v1345_v63 = vpop.f32.mrb[18].mxu1 }
 0xa00   : > { %v1348_v1 = vadd.f32 %v1343_v61, %v2026_v21  ;;  %v1608_v2 = vpop.f32.mrb[19].mxu1 }
 0xa02   : > { %1349 = vst.msk [vmem:[%s431_s22] sm:$0xff] %vm440_vm0, %v1348_v1 }
 0xa03   : > { %1713 = shalt.err (!%p1710_p3)
}
 0xa04   : > { %s1714_s0 = scalar_lea.hbm %s2089_s1, 128  ;;  %s1718_s22 = scalar_lea.hbm %s2145_s13, 256 }
 0xa05   : > { %p1715_p4 = scmp.ne.s32.totalorder %s2089_s1, %s1714_s0  ;;  %p1719_p9 = scmp.lt.u32.totalorder %s2089_s1, %s2145_s13 }
 0xa06   : > { %p1720_p10 = scmp.lt.u32.totalorder %s1718_s22, %s1714_s0  ;;  %p1722_p12 = scmp.lt.u32.totalorder %s1714_s0, %s2089_s1 }
 0xa07   : > { %p1716_p7 = pnand %p1715_p4, %p1889_p5 }
 0xa08   : > { %p1721_p11 = por %p1720_p10, %p1719_p9 }
 0xa09   : > { %p1717_p8 = pneg %p1716_p7 }
 0xa0a   : > { %p1723_p13 = por %p1722_p12, %p1721_p11 }
 0xa0c   : > { %p1724_p0 = pnand %p1723_p13, %p1717_p8 }
 0xa0e   : > { %1727 = shalt.err (!%p1724_p0)
}
 0xa0f   : > { %1609 = dma.vmem_to_hbm [thread:$0]  (%p1889_p5), %s2091_s23, 128, %s2089_s1, %s1351_s29  }
 0xa10 PF: > { %p1615_p1 = scmp.ge.s32.totalorder %s1762_s28, 2  ;;  %s1376_s2 = sand.u32 1, %s1750_s25  }
 0xa11   : > { %s1377_s15 = scalar_lea.sflag [#allocation7], %s1376_s2 }
 0xa12   : > { %p1612_p2 = pnand %p1615_p1, %p1893_p6 }
 0xa14   : > { %1745 = dma.done.wait (!%p1612_p2), %s1377_s15, 128  }
 0xa15   : > { %1747 = vsyncadd (!%p1612_p2), %s1377_s15, 4294967168  ;;  %p23_p3 = scmp.ge.s32.totalorder %s1876_s14, 4   ;;  %s2154_s25 = smov %s1754_s26 }
 0xa16   : > { %s2155_s26 = smov %s1758_s27  ;;  %s2156_s27 = smov %s1887_s17 }
 0xa17   : > { %s2157_s28 = smov %s1876_s14  ;;  %25 = sbr.rel (!%p23_p3) target bundleno = 7 (0x7), region = 116 }
 0xa1e   :  { %1382 = vsyncpa [#allocation7], 1 }
 0xa1f   :  { %1384 = vsyncpa [#allocation7 + $0x1], 1 }

// kernel: tpu_custom_call.1
= control target key start
LH: loop header
LB: loop body
LE: loop exit
PB: predicated region body
PF: predicated region fallthrough
CT: control target
= control target key end

     0   :  { %s2132_s0 = inlined_call_operand.vmem [shape: f32[2,8,32], index: 0, kind: input, shape index: {}]   ;;  %s2133_s1 = inlined_call_operand.vmem [shape: f32[1,32], index: 1, kind: input, shape index: {}]   ;;  %s2134_s2 = inlined_call_operand.vmem [shape: f32[1,32], index: 2, kind: input, shape index: {}]   ;;  %s2135_s3 = inlined_call_operand.vmem [shape: bf16[32,96], index: 3, kind: input, shape index: {}]   ;;  %s2136_s4 = inlined_call_operand.vmem [shape: f32[1,96], index: 4, kind: input, shape index: {}]   ;;  %s2137_s5 = inlined_call_operand.vmem [shape: bf16[32,32], index: 5, kind: input, shape index: {}]   ;;  %s2138_s6 = inlined_call_operand.vmem [shape: f32[1,32], index: 6, kind: input, shape index: {}]   ;;  %s2139_s7 = inlined_call_operand.vmem [shape: f32[1,32], index: 7, kind: input, shape index: {}]   ;;  %s2140_s8 = inlined_call_operand.vmem [shape: f32[1,32], index: 8, kind: input, shape index: {}]   ;;  %s2141_s9 = inlined_call_operand.vmem [shape: bf16[32,128], index: 9, kind: input, shape index: {}]   ;;  %s2142_s10 = inlined_call_operand.vmem [shape: f32[1,128], index: 10, kind: input, shape index: {}]   ;;  %s2143_s11 = inlined_call_operand.vmem [shape: bf16[128,32], index: 11, kind: input, shape index: {}]   ;;  %s2144_s12 = inlined_call_operand.vmem [shape: f32[1,32], index: 12, kind: input, shape index: {}]   ;;  %s2145_s13 = inlined_call_operand.hbm [shape: f32[2,8,32], index: 13, kind: output, shape index: {}]  }
   0x1   :  { %2146 = sst [smem:[#allocation9_spill]] %s2132_s0 }
   0x2   :  { %2147 = sst [smem:[#allocation10_spill]] %s2133_s1 }
   0x3   :  { %2148 = sst [smem:[#allocation11_spill]] %s2134_s2 }
   0x4   :  { %18 = vsyncpa [#allocation7], 0 }
   0x5   :  { %20 = vsyncpa [#allocation7 + $0x1], 0  ;;  %s1851_s25 = smov 0   ;;  %s1853_s26 = smov 0  }
   0x6   :  { %s1855_s27 = smov 0   ;;  %s1857_s28 = smov 0  }
   0x7 LB: > { %s1872_s29 = sadd.s32 4294967295, %s1762_s28   ;;  %s1432_s30 = sadd.s32 4294967294, %s1762_s28   ;;  %s1762_s28 = sphi %s1857_s28, %s2157_s28   ;;  %s1758_s27 = sphi %s1855_s27, %s2156_s27   ;;  %s1754_s26 = sphi %s1853_s26, %s2155_s26   ;;  %s1750_s25 = sphi %s1851_s25, %s2154_s25  }
   0x8   : > { %s1876_s14 = sadd.s32 1, %s1762_s28   ;;  %s311_s15 = sadd.s32 1, %s1758_s27 }
   0x9   : > { %s308_s16 = ssub.s32 %s1762_s28, %s1876_s14  ;;  %p321_p0 = scmp.ne.s32.totalorder %s1758_s27, %s1754_s26 }
   0xa   : > { %p309_p1 = scmp.eq.s32.totalorder %s308_s16, 0  ;;  %p322_p2 = scmp.eq.s32.totalorder %s1872_s29, 1 }
   0xb   : > { %p327_p3 = scmp.ne.s32.totalorder %s1754_s26, %s1750_s25  ;;  %p328_p4 = scmp.eq.s32.totalorder %s1432_s30, 1 }
   0xc   : > { %s1887_s17 = scalar_select %p309_p1, %s1758_s27, %s311_s15  }
   0xd   : > { %p1889_p5 = por %p322_p2, %p321_p0  ;;  %p1893_p6 = por %p328_p4, %p327_p3 }
   0xe   : > { %p1435_p7 = scmp.ge.s32.totalorder %s1762_s28, 1  ;;  %p389_p8 = scmp.lt.s32.totalorder %s1762_s28, 3 }
  0x10   : > { %p390_p9 = pnand %p1435_p7, %p389_p8 }
  0x11   : > { %p432_p10 = scmp.lt.s32.totalorder (!%p390_p9), %s1872_s29, 1  ;;  %vm440_vm0 = vcmask (!%p390_p9), 261120   ;;  %s2151_s0 = sld [smem:[#allocation9_spill]] (!%p390_p9)  ;;  %v1664_v7 = vld [vmem:[%s2135_s3] sm:$0xff] (!%p390_p9)   ;;  %v1764_v8 = vmov (!%p390_p9), 0.0   ;;  %vm1765_vm1 = vmmov (!%p390_p9), 0  }
  0x12   : > { %393 = sbr.rel (%p390_p9) target bundleno = 2576 (0xa10), region = 72  ;;  %1517 = vmatprep.subr.bf16.mxu0 (!%p390_p9), %v1764_v8  ;;  %1521 = vmatprep.mubr.msk.bf16.mxu0 (!%p390_p9), %vm1765_vm1, %v1764_v8  ;;  %v1665_v9 = vld [vmem:[%s2135_s3 + $0x8] sm:$0xff] (!%p390_p9)   ;;  %s2152_s1 = sld [smem:[#allocation10_spill]] (!%p390_p9)  ;;  %v1440_v20 = vld [vmem:[%s2136_s4] ss:$0 sm:$0xff] (!%p390_p9)  ;;  %vm537_vm2 = vcmask (!%p390_p9), 60416  }
  0x13   : > { %1518 = vmatpush3.bf16.msra.mxu0 (!%p390_p9), %v1664_v7  ;;  %1537 = vmatprep.subr.bf16.mxu1 (!%p390_p9), %v1764_v8  ;;  %s2153_s2 = sld [smem:[#allocation11_spill]] (!%p390_p9)  ;;  %s1766_s16 = smov (!%p390_p9), 80   ;;  %vm615_vm3 = vcmask (!%p390_p9), 64512   ;;  %vm855_vm4 = vcmask (!%p390_p9), 1043456   ;;  %vm1046_vm5 = vcmask (!%p390_p9), 126016   ;;  %vm1055_vm6 = vcmask (!%p390_p9), 191616  }
  0x14   : > { %1519 = vmatprep.subr.bf16.mxu0 (!%p390_p9), %v1764_v8  ;;  %1539 = vmatprep.mubr.msk.bf16.mxu1 (!%p390_p9), %vm1765_vm1, %v1764_v8  ;;  %s1769_s22 = smov (!%p390_p9), 120   ;;  %s1770_s23 = smov (!%p390_p9), 72   ;;  %vm1064_vm7 = vcmask (!%p390_p9), 257216  }
  0x15   : > { %s1772_s30 = smov (!%p390_p9), 104   ;;  %s1773_s15 = smov (!%p390_p9), 64  }
  0x17   : > { %1520 = vmatpush3.bf16.msra.mxu0 (!%p390_p9), %v1665_v9 }
  0x18   : > { %1525 = vmatprep.subr.bf16.mxu0 (!%p390_p9), %v1764_v8  ;;  %v1438_v14 = vld [vmem:[%s2152_s1] ss:$0 sm:$0xff] (!%p390_p9) }
  0x19   : > { %s433_s20 = scalar_select %p432_p10, %s1872_s29, 1  ;;  %v1439_v16 = vld [vmem:[%s2153_s2] ss:$0 sm:$0xff] }
  0x1b   : > { %s1437_s21 = sshll.u32 %s433_s20, 3  ;;  %s1767_s20 = smov 96  }
  0x1c   : > { %s435_s24 = scalar_lea.vmem %s2151_s0, %s1437_s21  ;;  %s1768_s21 = smov 88  }
  0x1d   : > { %v1904_v0 = vld [vmem:[%s435_s24] sm:$0xff]  ;;  %s1771_s24 = smov 112  }
  0x1e   : > { %v441_v1 = vsel %vm440_vm0, %v1904_v0, 0.0 }
  0x1f   : > { %442 = vadd.xlane.f32.xlu0 %v441_v1 }
  0xac   : > { %v443_v2 = vpop.xlane.xlu0 %442 }
  0xad   : > { %v445_v3 = vmul.f32 0.03125, %v443_v2 }
  0xaf   : > { %v446_v4 = vsub.f32 %v1904_v0, %v445_v3 }
  0xb1   : > { %v447_v5 = vmul.f32 %v446_v4, %v446_v4 }
  0xb3   : > { %v448_v6 = vsel %vm440_vm0, %v447_v5, 0.0 }
  0xb4   : > { %449 = vadd.xlane.f32.xlu0 %v448_v6 }
 0x141   : > { %v450_v10 = vpop.xlane.xlu0 %449 }
 0x142   : > { %v451_v11 = vmul.f32 0.03125, %v450_v10 }
 0x144   : > { %v452_v12 = vadd.f32 1e-05, %v451_v11 }
 0x146   : > { %1678 = vrsqrt.f32 %v452_v12 }
 0x150   : > { %v1679_v13 = vpop.eup %1678 }
 0x151   : > { %v454_v15 = vmul.f32 %v1679_v13, %v446_v4 }
 0x153   : > { %v461_v17 = vmul.f32 %v1438_v14, %v454_v15 }
 0x155   : > { %v468_v18 = vadd.f32 %v1439_v16, %v461_v17 }
 0x157   : > { %v469_v19 = vpack.c.bf16 %v468_v18, %v468_v18 }
 0x159   : > { %1522 = vmatmul.mubr.msk.bf16.vlgmr.msra.gmra.mrb[0].mxu0 %vm440_vm0, %v469_v19 }
 0x15a   : > { %1527 = vmatprep.mubr.msk.bf16.mxu0 %vm1765_vm1, %v1764_v8 }
 0x22c   : > { %v530_v21 = vpop.f32.mrb[0].mxu0 }
 0x22d   : > { %v531_v22 = vadd.f32 %v1440_v20, %v530_v21  ;;  %v1523_v23 = vpop.f32.mrb[1].mxu0 }
 0x22e   : > { %v533_v24 = vpop.f32.mrb[2].mxu0 }
 0x22f   : > { %v1936_v25 = vpack.c.bf16 %v531_v22, %v531_v22  ;;  %v1524_v26 = vpop.f32.mrb[3].mxu0 }
 0x231   : > { %576 = vrot.lane.b32.xlu0 %v1936_v25, %s1766_s16  ;;  %542 = vrot.lane.b32.xlu1 %v1936_v25, %s1767_s20  ;;  %538 = vst.msk [vmem:[#allocation2] sm:$0xf] %vm537_vm2, %v1936_v25  ;;  %s1774_s16 = smov 48   ;;  %s1775_s20 = smov 40  }
 0x235   : > { %557 = vrot.lane.b32.xlu1 %v1936_v25, %s1768_s21  ;;  %s1776_s21 = smov 56  }
 0x238   : > { %v607_v38 = vld [vmem:[#allocation2] sm:$0xf] }
 0x239   : > { %550 = vrot.lane.b32.xlu1 %v1936_v25, %s1769_s22  ;;  %s1777_s22 = smov 16  }
 0x23d   : > { %595 = vrot.lane.b32.xlu1 %v1936_v25, %s1770_s23 }
 0x241   : > { %569 = vrot.lane.b32.xlu1 %v1936_v25, %s1771_s24 }
 0x245   : > { %588 = vrot.lane.b32.xlu1 %v1936_v25, %s1772_s30  ;;  %s429_s30 = sand.u32 1, %s1754_s26  }
 0x2a3   : > { %v577_v27 = vpop.permute.xlu0 %576  ;;  %v543_v28 = vpop.permute.xlu1 %542 }
 0x2a4   : > { %581 = vst.msk [vmem:[#allocation3 + $0x8] sm:$0xf] %vm537_vm2, %v577_v27  ;;  %545 = vst.msk [vmem:[#allocation3] sm:$0xf] %vm537_vm2, %v543_v28 }
 0x2a7   : > { %v558_v29 = vpop.permute.xlu1 %557 }
 0x2a8   : > { %562 = vst.msk [vmem:[#allocation3 + $0x4] sm:$0xf] %vm537_vm2, %v558_v29 }
 0x2ab   : > { %v551_v30 = vpop.permute.xlu1 %550  ;;  %v611_v31 = vld [vmem:[#allocation3] sm:$0xf]  ;;  %v613_v32 = vld [vmem:[#allocation3 + $0x8] sm:$0xf] }
 0x2ac   : > { %556 = vst.msk [vmem:[#allocation2 + $0x4] sm:$0xf] %vm537_vm2, %v551_v30  ;;  %v620_v33 = vsel %vm615_vm3, %v611_v31, 0  ;;  %v712_v34 = vsel %vm615_vm3, %v613_v32, 0 }
 0x2ad   : > { %1526 = vmatpush3.bf16.xpose.msra.mxu0 %v620_v33  ;;  %1538 = vmatpush3.bf16.xpose.msra.mxu1 %v712_v34 }
 0x2ae   : > { %1531 = vmatprep.subr.bf16.mxu0 %v1764_v8  ;;  %1549 = vmatprep.subr.bf16.mxu1 %v1764_v8 }
 0x2af   : > { %v596_v35 = vpop.permute.xlu1 %595  ;;  %v612_v36 = vld [vmem:[#allocation3 + $0x4] sm:$0xf] }
 0x2b0   : > { %600 = vst.msk [vmem:[#allocation3 + $0xc] sm:$0xf] %vm537_vm2, %v596_v35  ;;  %v666_v39 = vsel %vm615_vm3, %v612_v36, 0 }
 0x2b3   : > { %v570_v37 = vpop.permute.xlu1 %569  ;;  %v608_v42 = vld [vmem:[#allocation2 + $0x4] sm:$0xf] }
 0x2b4   : > { %575 = vst.msk [vmem:[#allocation2 + $0x8] sm:$0xf] %vm537_vm2, %v570_v37  ;;  %1528 = vmatmul.mubr.msk.bf16.vlgmr.msra.gmra.mrb[4].mxu0 %vm615_vm3, %v607_v38 }
 0x2b5   : > { %1532 = vmatpush3.bf16.xpose.msra.mxu0 %v666_v39  ;;  %1533 = vmatprep.mubr.msk.bf16.mxu0 %vm1765_vm1, %v1764_v8 }
 0x2b6   : > { %1543 = vmatprep.subr.bf16.mxu0 %v1764_v8 }
 0x2b7   : > { %v589_v40 = vpop.permute.xlu1 %588  ;;  %v614_v41 = vld [vmem:[#allocation3 + $0xc] sm:$0xf] }
 0x2b8   : > { %594 = vst.msk [vmem:[#allocation2 + $0xc] sm:$0xf] %vm537_vm2, %v589_v40  ;;  %v758_v44 = vsel %vm615_vm3, %v614_v41, 0 }
 0x2bb   : > { %v609_v43 = vld [vmem:[#allocation2 + $0x8] sm:$0xf] }
 0x2bc   : > { %1534 = vmatmul.mubr.msk.bf16.vlgmr.msra.gmra.mrb[8].mxu0 %vm615_vm3, %v608_v42  ;;  %1540 = vmatmul.mubr.msk.bf16.vlgmr.msra.gmra.mrb[0].mxu1 %vm615_vm3, %v609_v43 }
 0x2bd   : > { %1544 = vmatpush3.bf16.xpose.msra.mxu0 %v758_v44  ;;  %1545 = vmatprep.mubr.msk.bf16.mxu0 %vm1765_vm1, %v1764_v8 }
 0x2be   : > { %1551 = vmatprep.mubr.msk.bf16.mxu1 %vm1765_vm1, %v1764_v8  ;;  %1555 = vmatprep.subr.bf16.mxu0 %v1764_v8 }
 0x2bf   : > { %v610_v45 = vld [vmem:[#allocation2 + $0xc] sm:$0xf] }
 0x2c4   : > { %1546 = vmatmul.mubr.msk.bf16.vlgmr.msra.gmra.mrb[12].mxu0 %vm615_vm3, %v610_v45 }
 0x2c5   : > { %1557 = vmatprep.mubr.msk.bf16.mxu0 %vm1765_vm1, %v1764_v8 }
 0x387   : > { %v656_v46 = vpop.f32.mrb[4].mxu0 }
 0x388   : > { %v1529_v47 = vpop.f32.mrb[5].mxu0  ;;  %v800_v48 = vsel %vm615_vm3, %v656_v46, -inf }
 0x389   : > { %801 = vmax.xlane.f32.xlu1 %v800_v48  ;;  %v659_v49 = vpop.f32.mrb[6].mxu0 }
 0x38a   : > { %v1530_v50 = vpop.f32.mrb[7].mxu0 }
 0x38f   : > { %v702_v51 = vpop.f32.mrb[8].mxu0  ;;  %v748_v52 = vpop.f32.mrb[0].mxu1 }
 0x390   : > { %v1535_v53 = vpop.f32.mrb[9].mxu0  ;;  %v1541_v54 = vpop.f32.mrb[1].mxu1  ;;  %v806_v55 = vsel %vm615_vm3, %v748_v52, -inf  ;;  %v803_v56 = vsel %vm615_vm3, %v702_v51, -inf }
 0x391   : > { %v751_v57 = vpop.f32.mrb[2].mxu1  ;;  %807 = vmax.xlane.f32.xlu1 %v806_v55  ;;  %804 = vmax.xlane.f32.xlu0 %v803_v56  ;;  %v705_v58 = vpop.f32.mrb[10].mxu0 }
 0x392   : > { %v1536_v59 = vpop.f32.mrb[11].mxu0  ;;  %v1542_v60 = vpop.f32.mrb[3].mxu1 }
 0x397   : > { %v794_v61 = vpop.f32.mrb[12].mxu0 }
 0x398   : > { %v1547_v62 = vpop.f32.mrb[13].mxu0  ;;  %v809_v63 = vsel %vm615_vm3, %v794_v61, -inf }
 0x399   : > { %810 = vmax.xlane.f32.xlu0 %v809_v63  ;;  %v797_v1 = vpop.f32.mrb[14].mxu0  ;;  %v1666_v62 = vld [vmem:[%s2137_s5] sm:$0xff]  }
 0x39a   : > { %v1548_v2 = vpop.f32.mrb[15].mxu0  ;;  %v1667_v1 = vld [vmem:[%s2137_s5 + $0x8] sm:$0xff]  }
 0x3a2   : > { %546 = vrot.lane.b32.xlu1 %v1936_v25, %s1773_s15  ;;  %s1436_s15 = sshll.u32 %s429_s30, 3 }
 0x416   : > { %v802_v3 = vpop.xlane.xlu1 %801 }
 0x417   : > { %v812_v4 = vsub.f32 %v656_v46, %v802_v3 }
 0x419   : > { %v816_v5 = vmul.f32 1.442695, %v812_v4 }
 0x41b   : > { %1680 = vpow2.f32 %v816_v5 }
 0x41e   : > { %v808_v6 = vpop.xlane.xlu1 %807  ;;  %v805_v7 = vpop.xlane.xlu0 %804 }
 0x41f   : > { %v814_v9 = vsub.f32 %v748_v52, %v808_v6  ;;  %v813_v10 = vsub.f32 %v702_v51, %v805_v7 }
 0x421   : > { %v820_v11 = vmul.f32 1.442695, %v814_v9  ;;  %v818_v12 = vmul.f32 1.442695, %v813_v10 }
 0x422   : > { %v547_v13 = vpop.permute.xlu1 %546 }
 0x423   : > { %1682 = vpow2.f32 %v820_v11  ;;  %549 = vst.msk [vmem:[#allocation4] sm:$0xf] %vm537_vm2, %v547_v13 }
 0x424   : > { %1684 = vpow2.f32 %v818_v12 }
 0x425   : > { %v1681_v14 = vpop.eup %1680 }
 0x426   : > { %v811_v15 = vpop.xlane.xlu0 %810  ;;  %v824_v16 = vsel %vm615_vm3, %v1681_v14, 0.0 }
 0x427   : > { %v815_v17 = vsub.f32 %v794_v61, %v811_v15  ;;  %825 = vadd.xlane.f32.xlu1 %v824_v16  ;;  %v1456_v16 = vld [vmem:[%s2138_s6] ss:$0 sm:$0xff] }
 0x429   : > { %v822_v18 = vmul.f32 1.442695, %v815_v17 }
 0x42a   : > { %v848_v19 = vld [vmem:[#allocation4] sm:$0xf] }
 0x42b   : > { %1686 = vpow2.f32 %v822_v18  ;;  %v857_v20 = vsel %vm855_vm4, %v848_v19, 0 }
 0x42c   : > { %1550 = vmatpush3.bf16.msra.mxu1 %v857_v20 }
 0x42d   : > { %v1683_v21 = vpop.eup %1682  ;;  %1561 = vmatprep.subr.bf16.mxu1 %v1764_v8 }
 0x42e   : > { %v1685_v22 = vpop.eup %1684  ;;  %v830_v23 = vsel %vm615_vm3, %v1683_v21, 0.0 }
 0x42f   : > { %831 = vadd.xlane.f32.xlu1 %v830_v23  ;;  %v827_v24 = vsel %vm615_vm3, %v1685_v22, 0.0 }
 0x430   : > { %828 = vadd.xlane.f32.xlu0 %v827_v24 }
 0x435   : > { %v1687_v26 = vpop.eup %1686 }
 0x436   : > { %v833_v27 = vsel %vm615_vm3, %v1687_v26, 0.0 }
 0x437   : > { %834 = vadd.xlane.f32.xlu0 %v833_v27 }
 0x440   : > { %582 = vrot.lane.b32.xlu1 %v1936_v25, %s1774_s16  ;;  %s1778_s16 = smov 8  }
 0x444   : > { %601 = vrot.lane.b32.xlu1 %v1936_v25, %s1775_s20  ;;  %s1779_s20 = smov 24  }
 0x44d   : > { %563 = vrot.lane.b32.xlu0 %v1936_v25, %s1776_s21  ;;  %s1476_s21 = sshll.u32 %s1872_s29, 7  ;;  %s1351_s29 = scalar_lea.sflag [#allocation7], %s429_s30 }
 0x44e   : > { %s2089_s1 = scalar_lea.hbm %s2145_s13, %s1476_s21 }
 0x4b4   : > { %v826_v28 = vpop.xlane.xlu1 %825 }
 0x4b5   : > { %1688 = vrcp.f32 %v826_v28 }
 0x4bc   : > { %v832_v29 = vpop.xlane.xlu1 %831 }
 0x4bd   : > { %1690 = vrcp.f32 %v832_v29  ;;  %v829_v31 = vpop.xlane.xlu0 %828 }
 0x4be   : > { %1692 = vrcp.f32 %v829_v31  ;;  %v1670_v31 = vld [vmem:[%s2143_s11] sm:$0xff]  }
 0x4bf   : > { %v1689_v30 = vpop.eup %1688 }
 0x4c0   : > { %v840_v32 = vmul.f32 %v1689_v30, %v1681_v14  ;;  %v583_v33 = vpop.permute.xlu1 %582  ;;  %v1668_v30 = vld [vmem:[%s2141_s9] sm:$0xff]  }
 0x4c1   : > { %587 = vst.msk [vmem:[#allocation4 + $0x8] sm:$0xf] %vm537_vm2, %v583_v33  ;;  %v1672_v33 = vld [vmem:[%s2143_s11 + $0x10] sm:$0xff]  }
 0x4c2   : > { %v844_v34 = vpack.c.bf16 %v840_v32, %v840_v32  ;;  %v1671_v32 = vld [vmem:[%s2143_s11 + $0x8] sm:$0xff]  }
 0x4c4   : > { %1552 = vmatmul.mubr.msk.bf16.vlgmr.msra.gmra.mrb[4].mxu1 %vm615_vm3, %v844_v34  ;;  %v602_v35 = vpop.permute.xlu1 %601  ;;  %v835_v36 = vpop.xlane.xlu0 %834 }
 0x4c5   : > { %606 = vst.msk [vmem:[#allocation4 + $0xc] sm:$0xf] %vm537_vm2, %v602_v35  ;;  %1563 = vmatprep.mubr.msk.bf16.mxu1 %vm1765_vm1, %v1764_v8  ;;  %1694 = vrcp.f32 %v835_v36 }
 0x4c7   : > { %v1691_v25 = vpop.eup %1690 }
 0x4c8   : > { %v842_v37 = vmul.f32 %v1691_v25, %v1683_v21  ;;  %v564_v38 = vpop.permute.xlu0 %563  ;;  %v850_v39 = vld [vmem:[#allocation4 + $0x8] sm:$0xf]  ;;  %v1693_v42 = vpop.eup %1692 }
 0x4c9   : > { %568 = vst.msk [vmem:[#allocation4 + $0x4] sm:$0xf] %vm537_vm2, %v564_v38  ;;  %v949_v40 = vsel %vm855_vm4, %v850_v39, 0  ;;  %v841_v43 = vmul.f32 %v1693_v42, %v1685_v22  ;;  %v1461_v39 = vld [vmem:[%s2140_s8] ss:$0 sm:$0xff] }
 0x4ca   : > { %1562 = vmatpush3.bf16.msra.mxu1 %v949_v40  ;;  %v846_v41 = vpack.c.bf16 %v842_v37, %v842_v37  ;;  %v1460_v37 = vld [vmem:[%s2139_s7] ss:$0 sm:$0xff] }
 0x4cb   : > { %1573 = vmatprep.subr.bf16.mxu1 %v1764_v8  ;;  %v845_v47 = vpack.c.bf16 %v841_v43, %v841_v43  ;;  %v1673_v43 = vld [vmem:[%s2143_s11 + $0x18] sm:$0xff]  }
 0x4cc   : > { %v851_v46 = vld [vmem:[#allocation4 + $0xc] sm:$0xf] }
 0x4cd   : > { %1564 = vmatmul.mubr.msk.bf16.vlgmr.msra.gmra.mrb[8].mxu1 %vm615_vm3, %v846_v41  ;;  %v995_v49 = vsel %vm855_vm4, %v851_v46, 0  ;;  %v1676_v46 = vld [vmem:[%s2143_s11 + $0x30] sm:$0xff]  }
 0x4ce   : > { %1577 = vmatprep.mubr.msk.bf16.mxu1 %vm1765_vm1, %v1764_v8  ;;  %1574 = vmatpush3.bf16.msra.mxu1 %v1666_v62 }
 0x4cf   : > { %v1695_v48 = vpop.eup %1694  ;;  %1575 = vmatprep.subr.bf16.mxu1 %v1764_v8 }
 0x4d0   : > { %v849_v44 = vld [vmem:[#allocation4 + $0x4] sm:$0xf]  ;;  %v843_v50 = vmul.f32 %v1695_v48, %v1687_v26  ;;  %v1462_v48 = vld [vmem:[%s2142_s10] ss:$0 sm:$0xff] }
 0x4d1   : > { %v903_v45 = vsel %vm855_vm4, %v849_v44, 0  ;;  %v1674_v44 = vld [vmem:[%s2143_s11 + $0x20] sm:$0xff]  }
 0x4d2   : > { %1556 = vmatpush3.bf16.msra.mxu0 %v903_v45  ;;  %v847_v51 = vpack.c.bf16 %v843_v50, %v843_v50  ;;  %1576 = vmatpush3.bf16.msra.mxu1 %v1667_v1  ;;  %v1675_v45 = vld [vmem:[%s2143_s11 + $0x28] sm:$0xff]  }
 0x4d3   : > { %1567 = vmatprep.subr.bf16.mxu0 %v1764_v8  ;;  %1589 = vmatprep.subr.bf16.mxu1 %v1764_v8 }
 0x4d5   : > { %1558 = vmatmul.mubr.msk.bf16.vlgmr.msra.gmra.mrb[16].mxu0 %vm615_vm3, %v845_v47  ;;  %v1677_v47 = vld [vmem:[%s2143_s11 + $0x38] sm:$0xff]  }
 0x4d6   : > { %1568 = vmatpush3.bf16.msra.mxu0 %v995_v49  ;;  %1569 = vmatprep.mubr.msk.bf16.mxu0 %vm1765_vm1, %v1764_v8 }
 0x4d7   : > { %1581 = vmatprep.subr.bf16.mxu0 %v1764_v8 }
 0x4dd   : > { %1570 = vmatmul.mubr.msk.bf16.vlgmr.msra.gmra.mrb[20].mxu0 %vm615_vm3, %v847_v51 }
 0x4de   : > { %1585 = vmatprep.mubr.msk.bf16.mxu0 %vm1765_vm1, %v1764_v8  ;;  %1582 = vmatpush3.bf16.msra.mxu0 %v1668_v30 }
 0x4df   : > { %1583 = vmatprep.subr.bf16.mxu0 %v1764_v8 }
 0x597   : > { %v893_v52 = vpop.f32.mrb[4].mxu1 }
 0x598   : > { %v1037_v53 = vpack.c.bf16 %v893_v52, %v893_v52  ;;  %v1553_v54 = vpop.f32.mrb[5].mxu1 }
 0x599   : > { %v896_v55 = vpop.f32.mrb[6].mxu1 }
 0x59a   : > { %1038 = vst.msk [vmem:[#allocation5] sm:$0xf] %vm537_vm2, %v1037_v53  ;;  %v1554_v56 = vpop.f32.mrb[7].mxu1 }
 0x5a0   : > { %v985_v57 = vpop.f32.mrb[8].mxu1 }
 0x5a1   : > { %v1481_v58 = vpack.c.bf16 %v985_v57, %v985_v57  ;;  %v1565_v59 = vpop.f32.mrb[9].mxu1 }
 0x5a2   : > { %v988_v60 = vpop.f32.mrb[10].mxu1  ;;  %v1466_v59 = vld [vmem:[%s2144_s12] ss:$0 sm:$0xff] }
 0x5a3   : > { %1052 = vrot.lane.b32.xlu1 %v1481_v58, %s1777_s22  ;;  %v1566_v61 = vpop.f32.mrb[11].mxu1  ;;  %s431_s22 = scalar_lea.vmem [#allocation6], %s1436_s15 }
 0x5a4   : > { %s1364_s23 = sshll.u32 %s431_s22, 4  ;;  %s2091_s23 = int_to_ptr.vmem [resolvable:$true] %s1364_s23 }
 0x5a5   : > { %s1700_s15 = scalar_lea.vmem %s2091_s23, 128 }
 0x5a6   : > { %p1701_p11 = scmp.ne.s32.totalorder %s2091_s23, %s1700_s15 }
 0x5a8   : > { %v939_v63 = vpop.f32.mrb[16].mxu0  ;;  %p1702_p12 = pnand %p1701_p11, %p1889_p5 }
 0x5a9   : > { %v1480_v2 = vpack.c.bf16 %v939_v63, %v939_v63  ;;  %v1559_v3 = vpop.f32.mrb[17].mxu0 }
 0x5aa   : > { %v942_v4 = vpop.f32.mrb[18].mxu0  ;;  %p1703_p13 = pneg %p1702_p12 }
 0x5ab   : > { %1043 = vrot.lane.b32.xlu0 %v1480_v2, %s1778_s16  ;;  %v1560_v5 = vpop.f32.mrb[19].mxu0  ;;  %s1780_s16 = smov [#allocation6]  }
 0x5b0   : > { %v1031_v6 = vpop.f32.mrb[20].mxu0 }
 0x5b1   : > { %v1482_v7 = vpack.c.bf16 %v1031_v6, %v1031_v6  ;;  %v1571_v9 = vpop.f32.mrb[21].mxu0 }
 0x5b2   : > { %v1034_v10 = vpop.f32.mrb[22].mxu0 }
 0x5b3   : > { %1061 = vrot.lane.b32.xlu0 %v1482_v7, %s1779_s20  ;;  %v1572_v11 = vpop.f32.mrb[23].mxu0  ;;  %s1704_s20 = sshll.u32 %s1780_s16, 4  ;;  %s1705_s20 = int_to_ptr.vmem [resolvable:$false] %s1704_s20 }
 0x5b4   : > { %s1706_s2 = scalar_lea.vmem %s1705_s20, 256  ;;  %p1707_p0 = scmp.lt.s32.totalorder %s2091_s23, %s1705_s20 }
 0x5b5   : > { %p1708_p1 = scmp.lt.s32.totalorder %s1706_s2, %s1700_s15 }
 0x5b7   : > { %p1709_p2 = por %p1708_p1, %p1707_p0 }
 0x5b9   : > { %p1710_p3 = pnand %p1709_p2, %p1703_p13 }
 0x615   : > { %v1053_v13 = vpop.permute.xlu1 %1052 }
 0x61d   : > { %v1044_v12 = vpop.permute.xlu0 %1043 }
 0x61e   : > { %1047 = vst.msk [vmem:[#allocation5] sm:$0xf] %vm1046_vm5, %v1044_v12 }
 0x61f   : > { %1056 = vst.msk [vmem:[#allocation5] sm:$0xf] %vm1055_vm6, %v1053_v13 }
 0x625   : > { %v1062_v14 = vpop.permute.xlu0 %1061 }
 0x626   : > { %1065 = vst.msk [vmem:[#allocation5] sm:$0xf] %vm1064_vm7, %v1062_v14 }
 0x62d   : > { %v1066_v15 = vld [vmem:[#allocation5] sm:$0xf] }
 0x62e   : > { %1578 = vmatmul.mubr.msk.bf16.vlgmr.msra.gmra.mrb[12].mxu1 %vm440_vm0, %v1066_v15 }
 0x62f   : > { %1605 = vmatprep.mubr.msk.bf16.mxu1 %vm1765_vm1, %v1764_v8  ;;  %1590 = vmatpush3.bf16.msra.mxu1 %v1670_v31 }
 0x630   : > { %1591 = vmatprep.subr.bf16.mxu1 %v1764_v8 }
 0x633   : > { %1592 = vmatpush3.bf16.msra.mxu1 %v1671_v32 }
 0x634   : > { %1593 = vmatprep.subr.bf16.mxu1 %v1764_v8 }
 0x637   : > { %1594 = vmatpush3.bf16.msra.mxu1 %v1672_v33 }
 0x638   : > { %1595 = vmatprep.subr.bf16.mxu1 %v1764_v8 }
 0x63b   : > { %1596 = vmatpush3.bf16.msra.mxu1 %v1673_v43 }
 0x63c   : > { %1597 = vmatprep.subr.bf16.mxu1 %v1764_v8 }
 0x63f   : > { %1598 = vmatpush3.bf16.msra.mxu1 %v1674_v44 }
 0x640   : > { %1599 = vmatprep.subr.bf16.mxu1 %v1764_v8 }
 0x643   : > { %1600 = vmatpush3.bf16.msra.mxu1 %v1675_v45 }
 0x644   : > { %1601 = vmatprep.subr.bf16.mxu1 %v1764_v8 }
 0x647   : > { %1602 = vmatpush3.bf16.msra.mxu1 %v1676_v46 }
 0x648   : > { %1603 = vmatprep.subr.bf16.mxu1 %v1764_v8 }
 0x64b   : > { %1604 = vmatpush3.bf16.msra.mxu1 %v1677_v47 }
 0x701   : > { %v1127_v17 = vpop.f32.mrb[12].mxu1 }
 0x702   : > { %v1128_v18 = vadd.f32 %v1456_v16, %v1127_v17  ;;  %v1579_v19 = vpop.f32.mrb[13].mxu1 }
 0x703   : > { %v1130_v20 = vpop.f32.mrb[14].mxu1 }
 0x704   : > { %v2026_v21 = vadd.f32 %v1128_v18, %v1904_v0  ;;  %v1580_v22 = vpop.f32.mrb[15].mxu1  ;;  %v1669_v0 = vld [vmem:[%s2141_s9 + $0x8] sm:$0xff]  }
 0x705   : > { %1584 = vmatpush3.bf16.msra.mxu0 %v1669_v0 }
 0x706   : > { %v1137_v23 = vsel %vm440_vm0, %v2026_v21, 0.0 }
 0x707   : > { %1138 = vadd.xlane.f32.xlu1 %v1137_v23 }
 0x794   : > { %v1139_v24 = vpop.xlane.xlu1 %1138 }
 0x795   : > { %v1140_v26 = vmul.f32 0.03125, %v1139_v24 }
 0x797   : > { %v1141_v27 = vsub.f32 %v2026_v21, %v1140_v26 }
 0x799   : > { %v1142_v28 = vmul.f32 %v1141_v27, %v1141_v27 }
 0x79b   : > { %v1143_v29 = vsel %vm440_vm0, %v1142_v28, 0.0 }
 0x79c   : > { %1144 = vadd.xlane.f32.xlu0 %v1143_v29 }
 0x829   : > { %v1145_v34 = vpop.xlane.xlu0 %1144 }
 0x82a   : > { %v1146_v35 = vmul.f32 0.03125, %v1145_v34 }
 0x82c   : > { %v1147_v36 = vadd.f32 1e-05, %v1146_v35 }
 0x82e   : > { %1696 = vrsqrt.f32 %v1147_v36 }
 0x838   : > { %v1697_v25 = vpop.eup %1696 }
 0x839   : > { %v1149_v38 = vmul.f32 %v1697_v25, %v1141_v27 }
 0x83b   : > { %v1156_v40 = vmul.f32 %v1460_v37, %v1149_v38 }
 0x83d   : > { %v1163_v41 = vadd.f32 %v1461_v39, %v1156_v40 }
 0x83f   : > { %v1164_v42 = vpack.c.bf16 %v1163_v41, %v1163_v41 }
 0x841   : > { %1586 = vmatmul.mubr.msk.bf16.vlgmr.msra.gmra.mrb[24].mxu0 %vm440_vm0, %v1164_v42 }
 0x914   : > { %v1225_v49 = vpop.f32.mrb[24].mxu0 }
 0x915   : > { %v1226_v50 = vadd.f32 %v1462_v48, %v1225_v49  ;;  %v1587_v51 = vpop.f32.mrb[25].mxu0 }
 0x916   : > { %v1228_v52 = vpop.f32.mrb[26].mxu0 }
 0x917   : > { %v1232_v53 = vmul.f32 0.70710677, %v1226_v50  ;;  %v1588_v54 = vpop.f32.mrb[27].mxu0  ;;  %v1231_v8 = vmul.f32 0.5, %v1226_v50 }
 0x919   : > { %1698 = verf.f32 %v1232_v53 }
 0x923   : > { %v1699_v55 = vpop.eup %1698 }
 0x924   : > { %v1234_v56 = vadd.f32 1.0, %v1699_v55 }
 0x926   : > { %v1235_v57 = vmul.f32 %v1234_v56, %v1231_v8 }
 0x928   : > { %v1236_v58 = vpack.c.bf16 %v1235_v57, %v1235_v57 }
 0x92a   : > { %1606 = vmatmul.mubr.bf16.vlgmr.msra.gmra.mrb[16].mxu1 %v1236_v58 }
 0x9fd   : > { %v1342_v60 = vpop.f32.mrb[16].mxu1 }
 0x9fe   : > { %v1343_v61 = vadd.f32 %v1466_v59, %v1342_v60  ;;  %v1607_v62 = vpop.f32.mrb[17].mxu1 }
 0x9ff   : > { %v1345_v63 = vpop.f32.mrb[18].mxu1 }
 0xa00   : > { %v1348_v1 = vadd.f32 %v1343_v61, %v2026_v21  ;;  %v1608_v2 = vpop.f32.mrb[19].mxu1 }
 0xa02   : > { %1349 = vst.msk [vmem:[%s431_s22] sm:$0xff] %vm440_vm0, %v1348_v1 }
 0xa03   : > { %1713 = shalt.err (!%p1710_p3)
}
 0xa04   : > { %s1714_s0 = scalar_lea.hbm %s2089_s1, 128  ;;  %s1718_s22 = scalar_lea.hbm %s2145_s13, 256 }
 0xa05   : > { %p1715_p4 = scmp.ne.s32.totalorder %s2089_s1, %s1714_s0  ;;  %p1719_p9 = scmp.lt.u32.totalorder %s2089_s1, %s2145_s13 }
 0xa06   : > { %p1720_p10 = scmp.lt.u32.totalorder %s1718_s22, %s1714_s0  ;;  %p1722_p12 = scmp.lt.u32.totalorder %s1714_s0, %s2089_s1 }
 0xa07   : > { %p1716_p7 = pnand %p1715_p4, %p1889_p5 }
 0xa08   : > { %p1721_p11 = por %p1720_p10, %p1719_p9 }
 0xa09   : > { %p1717_p8 = pneg %p1716_p7 }
 0xa0a   : > { %p1723_p13 = por %p1722_p12, %p1721_p11 }
 0xa0c   : > { %p1724_p0 = pnand %p1723_p13, %p1717_p8 }
 0xa0e   : > { %1727 = shalt.err (!%p1724_p0)
}
 0xa0f   : > { %1609 = dma.vmem_to_hbm [thread:$0]  (%p1889_p5), %s2091_s23, 128, %s2089_s1, %s1351_s29  }
 0xa10 PF: > { %p1615_p1 = scmp.ge.s32.totalorder %s1762_s28, 2  ;;  %s1376_s2 = sand.u32 1, %s1750_s25  }
 0xa11   : > { %s1377_s15 = scalar_lea.sflag [#allocation7], %s1376_s2 }
 0xa12   : > { %p1612_p2 = pnand %p1615_p1, %p1893_p6 }
 0xa14   : > { %1745 = dma.done.wait (!%p1612_p2), %s1377_s15, 128  }
 0xa15   : > { %1747 = vsyncadd (!%p1612_p2), %s1377_s15, 4294967168  ;;  %p23_p3 = scmp.ge.s32.totalorder %s1876_s14, 4   ;;  %s2154_s25 = smov %s1754_s26 }
 0xa16   : > { %s2155_s26 = smov %s1758_s27  ;;  %s2156_s27 = smov %s1887_s17 }
 0xa17   : > { %s2157_s28 = smov %s1876_s14  ;;  %25 = sbr.rel (!%p23_p3) target bundleno = 7 (0x7), region = 116 }
 0xa1e   :  { %1382 = vsyncpa [#allocation7], 1 }
 0xa1f   :  { %1384 = vsyncpa [#allocation7 + $0x1], 1 }

</bundles_post_ra>
